<compile_context>
chip_gen: v7x
topology: tpu7x:2x2x1
jax: 0.10.0
libtpu: 0.0.40
codegen_flags: <defaults>
</compile_context>

<pallas_src>
import jax
import jax.numpy as jnp
from jax.experimental import pallas as pl
from jax.experimental.pallas import tpu as pltpu

F_IN = 36            # Critic input features (PyTorch spec)
F_PAD = 64           # feature dim zero-padded for aligned vreg loads
H1, H2, H3 = 512, 256, 128


def _round_up(n, m):
    return ((n + m - 1) // m) * m


def critic_kernel(x_ref,
                  w1_ref, b1_ref,
                  w2_ref, b2_ref,
                  w3_ref, b3_ref,
                  w4t_ref, b4_ref,
                  out_ref):
    """One batch tile: (TB, F_PAD) f32 -> (1, TB) critic scores (lane-dense)."""
    x = x_ref[...]                                            # (TB, F_PAD) f32

    # Layers 1-3: bf16 MXU inputs, f32 accumulation, f32 elementwise.
    h = jnp.dot(x.astype(jnp.bfloat16), w1_ref[...],
                preferred_element_type=jnp.float32) + b1_ref[...]
    h = jnp.maximum(h, 0.2 * h)                               # LeakyReLU(0.2)

    h = jnp.dot(h.astype(jnp.bfloat16), w2_ref[...],
                preferred_element_type=jnp.float32) + b2_ref[...]
    h = jnp.maximum(h, 0.2 * h)

    h = jnp.dot(h.astype(jnp.bfloat16), w3_ref[...],
                preferred_element_type=jnp.float32) + b3_ref[...]
    h = jnp.maximum(h, 0.2 * h)                               # (TB, 128) f32

    # Layer 4 (128 -> 1): contract w4^T (1,128) against h's feature axis so
    # the per-tile result is (1, TB) with batch on the LANE axis -> dense,
    # unmasked stores (instead of a lane-sparse (TB, 1) output).
    y = jax.lax.dot_general(
        w4t_ref[...], h,
        dimension_numbers=(((1,), (1,)), ((), ())),
        preferred_element_type=jnp.float32)                   # (1, TB)
    out_ref[...] = y + b4_ref[...]


def critic_forward(x, params, *, block_batch=256):
    """x: (B, 36) float32. params: dict w1..w4 / b1..b4, (in, out)-major f32."""
    B = x.shape[0]
    # Batch tile: multiple of 128 so the (1, TB) output block stays lane-dense
    # even with a multi-step grid.  Cap is well inside v7x's 64 MiB VMEM.
    TB = min(_round_up(block_batch, 128), _round_up(B, 128))
    B_pad = _round_up(B, TB)
    n_tiles = B_pad // TB

    # Zero-pad batch (to TB multiple) and features (36 -> 64): exact semantics.
    x_pad = jnp.pad(x, ((0, B_pad - B), (0, F_PAD - F_IN)))

    # Weights resident in VMEM for the whole grid; bf16 MXU inputs for L1-3.
    w1 = jnp.pad(params["w1"], ((0, F_PAD - F_IN), (0, 0))).astype(jnp.bfloat16)
    w2 = params["w2"].astype(jnp.bfloat16)
    w3 = params["w3"].astype(jnp.bfloat16)
    w4t = params["w4"].reshape(1, H3).astype(jnp.float32)      # (1, 128)
    b1 = params["b1"].astype(jnp.float32)
    b2 = params["b2"].astype(jnp.float32)
    b3 = params["b3"].astype(jnp.float32)
    b4 = jnp.broadcast_to(params["b4"].reshape(1, 1), (1, TB)).astype(jnp.float32)

    flat = (x_pad, w1, b1, w2, b2, w3, b3, w4t, b4)

    x_spec = pl.BlockSpec((TB, F_PAD), lambda i: (i, 0))
    def resident(a):
        return pl.BlockSpec(a.shape, lambda i: (0, 0))
    in_specs = [x_spec] + [resident(a) for a in flat[1:]]
    out_spec = pl.BlockSpec((1, TB), lambda i: (0, i))

    flops = 2 * B_pad * (F_PAD * H1 + H1 * H2 + H2 * H3 + H3)
    bytes_accessed = (x_pad.size * 4
                      + (w1.size + w2.size + w3.size) * 2
                      + (w4t.size + b1.size + b2.size + b3.size + b4.size) * 4
                      + B_pad * 4)

    out = pl.pallas_call(
        critic_kernel,
        out_shape=jax.ShapeDtypeStruct((1, B_pad), jnp.float32),
        grid_spec=pltpu.PrefetchScalarGridSpec(
            num_scalar_prefetch=0,
            grid=(n_tiles,),
            in_specs=in_specs,
            out_specs=out_spec,
        ),
        compiler_params=pltpu.CompilerParams(
            dimension_semantics=("parallel",)),
        cost_estimate=pl.CostEstimate(
            flops=flops, transcendentals=0, bytes_accessed=bytes_accessed),
    )(*flat)

    return out[0, :B].reshape(B, 1)


def init_params(key):
    """Deterministic synthetic init mimicking nn.Linear's U(-1/sqrt(fan_in), +)."""
    dims = [(F_IN, H1), (H1, H2), (H2, H3), (H3, 1)]
    params = {}
    keys = jax.random.split(key, 2 * len(dims))
    for i, (fin, fout) in enumerate(dims):
        bound = 1.0 / jnp.sqrt(jnp.float32(fin))
        w = jax.random.uniform(keys[2 * i], (fin, fout),
                               minval=-bound, maxval=bound, dtype=jnp.float32)
        b = jax.random.uniform(keys[2 * i + 1], (1, fout),
                               minval=-bound, maxval=bound, dtype=jnp.float32)
        params[f"w{i + 1}"] = w
        params[f"b{i + 1}"] = b
    return params


def critic_reference(x, params):
    """Pure-JAX reference mirroring the kernel's precision choices
    (bf16 matmul inputs / f32 accumulation for layers 1-3, f32 last layer)."""
    h = x
    for i in (1, 2, 3):
        w = params[f"w{i}"].astype(jnp.bfloat16)
        h = jnp.dot(h.astype(jnp.bfloat16), w,
                    preferred_element_type=jnp.float32) + params[f"b{i}"]
        h = jnp.maximum(h, 0.2 * h)
    return jnp.dot(h, params["w4"],
                   preferred_element_type=jnp.float32) + params["b4"]


if __name__ == "__main__":
    key = jax.random.PRNGKey(0)
    k_param, k_x = jax.random.split(key)

    params = init_params(k_param)
    B = 8
    x = jax.random.normal(k_x, (B, 36), dtype=jnp.float32)

    out = critic_forward(x, params)
    out = jax.block_until_ready(out)

    ref = critic_reference(x, params)
    assert out.shape == (B, 1), out.shape
    assert jnp.allclose(out, ref, atol=1e-3, rtol=1e-3), "mismatch vs reference"

    print("KERNEL_OK")
</pallas_src>

<mosaic_0001>
module attributes {stable_mosaic.version = 11 : i64} {
  func.func @critic_kernel(%arg0: i32, %arg1: memref<128x64xf32, #tpu.memory_space<vmem>>, %arg2: memref<64x512xbf16, #tpu.memory_space<vmem>>, %arg3: memref<1x512xf32, #tpu.memory_space<vmem>>, %arg4: memref<512x256xbf16, #tpu.memory_space<vmem>>, %arg5: memref<1x256xf32, #tpu.memory_space<vmem>>, %arg6: memref<256x128xbf16, #tpu.memory_space<vmem>>, %arg7: memref<1x128xf32, #tpu.memory_space<vmem>>, %arg8: memref<1x128xf32, #tpu.memory_space<vmem>>, %arg9: memref<1x128xf32, #tpu.memory_space<vmem>>, %arg10: memref<1x128xf32, #tpu.memory_space<vmem>>) attributes {dimension_semantics = [#tpu.dimension_semantics<parallel>], iteration_bounds = array<i64: 1>, scalar_prefetch = 0 : i64, scratch_operands = 0 : i64, tpu.core_type = #tpu.core_type<tc>, window_params = [{transform_indices = @transform_0, window_bounds = array<i64: 128, 64>}, {pipeline_mode = #tpu.pipeline_mode<synchronous>, transform_indices = @transform_1, window_bounds = array<i64: 64, 512>}, {pipeline_mode = #tpu.pipeline_mode<synchronous>, transform_indices = @transform_2, window_bounds = array<i64: 1, 512>}, {pipeline_mode = #tpu.pipeline_mode<synchronous>, transform_indices = @transform_3, window_bounds = array<i64: 512, 256>}, {pipeline_mode = #tpu.pipeline_mode<synchronous>, transform_indices = @transform_4, window_bounds = array<i64: 1, 256>}, {pipeline_mode = #tpu.pipeline_mode<synchronous>, transform_indices = @transform_5, window_bounds = array<i64: 256, 128>}, {pipeline_mode = #tpu.pipeline_mode<synchronous>, transform_indices = @transform_6, window_bounds = array<i64: 1, 128>}, {pipeline_mode = #tpu.pipeline_mode<synchronous>, transform_indices = @transform_7, window_bounds = array<i64: 1, 128>}, {pipeline_mode = #tpu.pipeline_mode<synchronous>, transform_indices = @transform_8, window_bounds = array<i64: 1, 128>}, {transform_indices = @transform_9, window_bounds = array<i64: 1, 128>}]} {
    %c0 = arith.constant 0 : index
    %c0_0 = arith.constant 0 : index
    %0 = vector.load %arg1[%c0, %c0_0] : memref<128x64xf32, #tpu.memory_space<vmem>>, vector<128x64xf32>
    %1 = arith.truncf %0 : vector<128x64xf32> to vector<128x64xbf16>
    %c0_1 = arith.constant 0 : index
    %c0_2 = arith.constant 0 : index
    %2 = vector.load %arg2[%c0_1, %c0_2] : memref<64x512xbf16, #tpu.memory_space<vmem>>, vector<64x512xbf16>
    %cst = arith.constant dense<0.000000e+00> : vector<128x512xf32>
    %3 = tpu.matmul %1, %2, %cst {dimension_numbers = #tpu.dot_dimension_numbers<[1], [0], [0], [1], [0, 0, 1, 1], [], []>} : vector<128x64xbf16>, vector<64x512xbf16>, vector<128x512xf32> -> vector<128x512xf32>
    %c0_3 = arith.constant 0 : index
    %c0_4 = arith.constant 0 : index
    %4 = vector.load %arg3[%c0_3, %c0_4] : memref<1x512xf32, #tpu.memory_space<vmem>>, vector<1x512xf32>
    %5 = vector.broadcast %4 : vector<1x512xf32> to vector<128x512xf32>
    %6 = arith.addf %3, %5 : vector<128x512xf32>
    %cst_5 = arith.constant 2.000000e-01 : f32
    %7 = vector.broadcast %cst_5 : f32 to vector<128x512xf32>
    %8 = arith.mulf %7, %6 : vector<128x512xf32>
    %9 = arith.maximumf %6, %8 : vector<128x512xf32>
    %10 = arith.truncf %9 : vector<128x512xf32> to vector<128x512xbf16>
    %c0_6 = arith.constant 0 : index
    %c0_7 = arith.constant 0 : index
    %11 = vector.load %arg4[%c0_6, %c0_7] : memref<512x256xbf16, #tpu.memory_space<vmem>>, vector<512x256xbf16>
    %cst_8 = arith.constant dense<0.000000e+00> : vector<128x256xf32>
    %12 = tpu.matmul %10, %11, %cst_8 {dimension_numbers = #tpu.dot_dimension_numbers<[1], [0], [0], [1], [0, 0, 1, 1], [], []>} : vector<128x512xbf16>, vector<512x256xbf16>, vector<128x256xf32> -> vector<128x256xf32>
    %c0_9 = arith.constant 0 : index
    %c0_10 = arith.constant 0 : index
    %13 = vector.load %arg5[%c0_9, %c0_10] : memref<1x256xf32, #tpu.memory_space<vmem>>, vector<1x256xf32>
    %14 = vector.broadcast %13 : vector<1x256xf32> to vector<128x256xf32>
    %15 = arith.addf %12, %14 : vector<128x256xf32>
    %cst_11 = arith.constant 2.000000e-01 : f32
    %16 = vector.broadcast %cst_11 : f32 to vector<128x256xf32>
    %17 = arith.mulf %16, %15 : vector<128x256xf32>
    %18 = arith.maximumf %15, %17 : vector<128x256xf32>
    %19 = arith.truncf %18 : vector<128x256xf32> to vector<128x256xbf16>
    %c0_12 = arith.constant 0 : index
    %c0_13 = arith.constant 0 : index
    %20 = vector.load %arg6[%c0_12, %c0_13] : memref<256x128xbf16, #tpu.memory_space<vmem>>, vector<256x128xbf16>
    %cst_14 = arith.constant dense<0.000000e+00> : vector<128x128xf32>
    %21 = tpu.matmul %19, %20, %cst_14 {dimension_numbers = #tpu.dot_dimension_numbers<[1], [0], [0], [1], [0, 0, 1, 1], [], []>} : vector<128x256xbf16>, vector<256x128xbf16>, vector<128x128xf32> -> vector<128x128xf32>
    %c0_15 = arith.constant 0 : index
    %c0_16 = arith.constant 0 : index
    %22 = vector.load %arg7[%c0_15, %c0_16] : memref<1x128xf32, #tpu.memory_space<vmem>>, vector<1x128xf32>
    %23 = vector.broadcast %22 : vector<1x128xf32> to vector<128x128xf32>
    %24 = arith.addf %21, %23 : vector<128x128xf32>
    %cst_17 = arith.constant 2.000000e-01 : f32
    %25 = vector.broadcast %cst_17 : f32 to vector<128x128xf32>
    %26 = arith.mulf %25, %24 : vector<128x128xf32>
    %27 = arith.maximumf %24, %26 : vector<128x128xf32>
    %c0_18 = arith.constant 0 : index
    %c0_19 = arith.constant 0 : index
    %28 = vector.load %arg8[%c0_18, %c0_19] : memref<1x128xf32, #tpu.memory_space<vmem>>, vector<1x128xf32>
    %cst_20 = arith.constant dense<0.000000e+00> : vector<1x128xf32>
    %29 = tpu.matmul %28, %27, %cst_20 {dimension_numbers = #tpu.dot_dimension_numbers<[1], [1], [0], [0], [0, 0, 1, 0], [], []>} : vector<1x128xf32>, vector<128x128xf32>, vector<1x128xf32> -> vector<1x128xf32>
    %c0_21 = arith.constant 0 : index
    %c0_22 = arith.constant 0 : index
    %30 = vector.load %arg9[%c0_21, %c0_22] : memref<1x128xf32, #tpu.memory_space<vmem>>, vector<1x128xf32>
    %31 = arith.addf %29, %30 : vector<1x128xf32>
    %c0_23 = arith.constant 0 : index
    %c0_24 = arith.constant 0 : index
    %32 = vector.load %arg10[%c0_23, %c0_24] : memref<1x128xf32, #tpu.memory_space<vmem>>, vector<1x128xf32>
    tpu.vector_store %arg10[%c0_23, %c0_24], %31 {strides = array<i32>} : memref<1x128xf32, #tpu.memory_space<vmem>>, vector<1x128xf32>,
    return
  }
  func.func @transform_0(%arg0: i32) -> (i32, i32) {
    %c0_i32 = arith.constant 0 : i32
    %c0_i32_0 = arith.constant 0 : i32
    return %arg0, %c0_i32 : i32, i32
  }
  func.func @transform_1(%arg0: i32) -> (i32, i32) {
    %c0_i32 = arith.constant 0 : i32
    %c0_i32_0 = arith.constant 0 : i32
    %c0_i32_1 = arith.constant 0 : i32
    return %c0_i32, %c0_i32_0 : i32, i32
  }
  func.func @transform_2(%arg0: i32) -> (i32, i32) {
    %c0_i32 = arith.constant 0 : i32
    %c0_i32_0 = arith.constant 0 : i32
    %c0_i32_1 = arith.constant 0 : i32
    return %c0_i32, %c0_i32_0 : i32, i32
  }
  func.func @transform_3(%arg0: i32) -> (i32, i32) {
    %c0_i32 = arith.constant 0 : i32
    %c0_i32_0 = arith.constant 0 : i32
    %c0_i32_1 = arith.constant 0 : i32
    return %c0_i32, %c0_i32_0 : i32, i32
  }
  func.func @transform_4(%arg0: i32) -> (i32, i32) {
    %c0_i32 = arith.constant 0 : i32
    %c0_i32_0 = arith.constant 0 : i32
    %c0_i32_1 = arith.constant 0 : i32
    return %c0_i32, %c0_i32_0 : i32, i32
  }
  func.func @transform_5(%arg0: i32) -> (i32, i32) {
    %c0_i32 = arith.constant 0 : i32
    %c0_i32_0 = arith.constant 0 : i32
    %c0_i32_1 = arith.constant 0 : i32
    return %c0_i32, %c0_i32_0 : i32, i32
  }
  func.func @transform_6(%arg0: i32) -> (i32, i32) {
    %c0_i32 = arith.constant 0 : i32
    %c0_i32_0 = arith.constant 0 : i32
    %c0_i32_1 = arith.constant 0 : i32
    return %c0_i32, %c0_i32_0 : i32, i32
  }
  func.func @transform_7(%arg0: i32) -> (i32, i32) {
    %c0_i32 = arith.constant 0 : i32
    %c0_i32_0 = arith.constant 0 : i32
    %c0_i32_1 = arith.constant 0 : i32
    return %c0_i32, %c0_i32_0 : i32, i32
  }
  func.func @transform_8(%arg0: i32) -> (i32, i32) {
    %c0_i32 = arith.constant 0 : i32
    %c0_i32_0 = arith.constant 0 : i32
    %c0_i32_1 = arith.constant 0 : i32
    return %c0_i32, %c0_i32_0 : i32, i32
  }
  func.func @transform_9(%arg0: i32) -> (i32, i32) {
    %c0_i32 = arith.constant 0 : i32
    %c0_i32_0 = arith.constant 0 : i32
    return %c0_i32, %arg0 : i32, i32
  }
}

</mosaic_0001>

<bundles_post_ra>
// kernel: tpu_custom_call.1
= control target key start
LH: loop header
LB: loop body
LE: loop exit
PB: predicated region body
PF: predicated region fallthrough
CT: control target
= control target key end

     0   :  { %14 = vsyncpa [#allocation3], 0  ;;  %s2802_s0 = inlined_call_operand.vmem [shape: f32[128,64], index: 0, kind: input, shape index: {}]   ;;  %s2803_s1 = inlined_call_operand.vmem [shape: bf16[64,512], index: 1, kind: input, shape index: {}]   ;;  %s2804_s2 = inlined_call_operand.vmem [shape: f32[1,512], index: 2, kind: input, shape index: {}]   ;;  %s2805_s3 = inlined_call_operand.hbm [shape: bf16[512,256], index: 3, kind: input, shape index: {}]   ;;  %s2806_s4 = inlined_call_operand.vmem [shape: f32[1,256], index: 4, kind: input, shape index: {}]   ;;  %s2807_s5 = inlined_call_operand.hbm [shape: bf16[256,128], index: 5, kind: input, shape index: {}]   ;;  %s2808_s6 = inlined_call_operand.vmem [shape: f32[1,128], index: 6, kind: input, shape index: {}]   ;;  %s2809_s7 = inlined_call_operand.vmem [shape: f32[1,128], index: 7, kind: input, shape index: {}]   ;;  %s2810_s8 = inlined_call_operand.vmem [shape: f32[1,128], index: 8, kind: input, shape index: {}]   ;;  %s2811_s9 = inlined_call_operand.hbm [shape: f32[1,128], index: 9, kind: output, shape index: {}]  }
   0x1   :  { %15 = vsyncpa [#allocation6], 0 }
   0x2   :  { %16 = vsyncpa [#allocation4], 0  ;;  %s2238_s30 = smov [#allocation2]   ;;  %s2166_s13 = scalar_lea.hbm %s2805_s3, 8192 }
   0x3   :  { %s28_s10 = sshll.u32 %s2238_s30, 4  ;;  %p2167_p0 = scmp.ne.s32.totalorder %s2805_s3, %s2166_s13  ;;  %s29_s10 = int_to_ptr.vmem [resolvable:$true] %s28_s10 }
   0x4   :  { %p2170_p1 = scmp.lt.u32.totalorder %s2166_s13, %s2805_s3 }
   0x6   :  { %p2172_p2 = pnand %p2170_p1, %p2167_p0 }
   0x8   :  { %2175 = shalt.err (!%p2172_p2)
}
   0x9   :  { %s2176_s18 = scalar_lea.vmem %s29_s10, 8192  ;;  %p2181_p4 = scmp.lt.s32.totalorder %s29_s10, %s29_s10 }
   0xa   :  { %p2177_p3 = scmp.ne.s32.totalorder %s29_s10, %s2176_s18  ;;  %p2182_p5 = scmp.lt.s32.totalorder %s2176_s18, %s2176_s18 }
   0xc   :  { %p2183_p6 = por %p2182_p5, %p2181_p4 }
   0xe   :  { %p2184_p7 = pnand %p2183_p6, %p2177_p3 }
  0x10   :  { %2187 = shalt.err (!%p2184_p7)
}
  0x11   :  { %s2239_s19 = smov 128   ;;  %s2240_s20 = smov 8  }
  0x12   :  { %34 = dma.hbm_to_vmem [thread:$0]  %s2805_s3, 8192, %s29_s10, [#allocation3], %s2239_s19, %s2239_s19, %s2240_s20  }
  0x13   :  { %s2241_s23 = smov [#allocation5]   ;;  %s2188_s27 = scalar_lea.hbm %s2807_s5, 2048 }
  0x14   :  { %s42_s24 = sshll.u32 %s2241_s23, 4  ;;  %p2189_p8 = scmp.ne.s32.totalorder %s2807_s5, %s2188_s27  ;;  %s43_s24 = int_to_ptr.vmem [resolvable:$true] %s42_s24 }
  0x15   :  { %p2192_p9 = scmp.lt.u32.totalorder %s2188_s27, %s2807_s5 }
  0x17   :  { %p2194_p10 = pnand %p2192_p9, %p2189_p8 }
  0x19   :  { %2197 = shalt.err (!%p2194_p10)
}
  0x1a   :  { %s2198_s12 = scalar_lea.vmem %s43_s24, 2048  ;;  %p2203_p12 = scmp.lt.s32.totalorder %s43_s24, %s43_s24 }
  0x1b   :  { %p2199_p11 = scmp.ne.s32.totalorder %s43_s24, %s2198_s12  ;;  %p2204_p13 = scmp.lt.s32.totalorder %s2198_s12, %s2198_s12 }
  0x1d   :  { %p2205_p0 = por %p2204_p13, %p2203_p12 }
  0x1f   :  { %p2206_p1 = pnand %p2205_p0, %p2199_p11 }
  0x21   :  { %2209 = shalt.err (!%p2206_p1)
}
  0x22   :  { %s2242_s3 = smov 64   ;;  %s2243_s10 = smov 4  }
  0x23   :  { %48 = dma.hbm_to_vmem [thread:$0]  %s2807_s5, 2048, %s43_s24, [#allocation6], %s2242_s3, %s2242_s3, %s2243_s10  }
  0x24   :  { %2232 = dma.done.wait [#allocation3], 8192  }
  0x25   :  { %2233 = vsyncadd [#allocation3], 4294959104 }
  0x26   :  { %2234 = dma.done.wait [#allocation6], 2048  }
  0x27   :  { %2235 = vsyncadd [#allocation6], 4294965248  ;;  %v2244_v0 = vmov 0   ;;  %v2030_v1 = vld [vmem:[%s2803_s1 + $0x4] ss:$16 sps:$4 sm:$0xff]   ;;  %v63_v17 = vld [vmem:[%s2802_s0 + $0x8] sm:$0xff] }
  0x28   :  { %261 = vmatprep.mubr.bf16.mxu0 %v2244_v0  ;;  %374 = vmatprep.mubr.bf16.mxu1 %v2244_v0  ;;  %v2032_v2 = vld [vmem:[%s2803_s1] ss:$16 sps:$4 sm:$0xff]   ;;  %v2033_v3 = vld [vmem:[%s2803_s1 + $0xc] ss:$16 sps:$4 sm:$0xff]   ;;  %v2035_v4 = vld [vmem:[%s2803_s1 + $0x8] ss:$16 sps:$4 sm:$0xff]  }
  0x29   :  { %229 = vmatprep.subr.bf16.mxu0 %v2030_v1  ;;  %v2036_v5 = vld [vmem:[%s2803_s1 + $0x24] ss:$16 sps:$4 sm:$0xff]   ;;  %v2038_v6 = vld [vmem:[%s2803_s1 + $0x20] ss:$16 sps:$4 sm:$0xff]   ;;  %342 = vmatprep.subr.bf16.mxu1 %v2033_v3  ;;  %v2039_v7 = vld [vmem:[%s2803_s1 + $0x2c] ss:$16 sps:$4 sm:$0xff]  }
  0x2a   :  { %230 = vmatpush1.bf16.msra.mxu0 %v2032_v2  ;;  %343 = vmatpush1.bf16.msra.mxu1 %v2035_v4  ;;  %v2041_v8 = vld [vmem:[%s2803_s1 + $0x28] ss:$16 sps:$4 sm:$0xff]   ;;  %v2042_v9 = vld [vmem:[%s2803_s1 + $0x44] ss:$16 sps:$4 sm:$0xff]   ;;  %v2044_v10 = vld [vmem:[%s2803_s1 + $0x40] ss:$16 sps:$4 sm:$0xff]  }
  0x2b   :  { %231 = vmatprep.subr.bf16.mxu0 %v2036_v5  ;;  %344 = vmatprep.subr.bf16.mxu1 %v2039_v7  ;;  %v2045_v11 = vld [vmem:[%s2803_s1 + $0x4c] ss:$16 sps:$4 sm:$0xff]   ;;  %v2048_v12 = vld [vmem:[%s2803_s1 + $0x64] ss:$16 sps:$4 sm:$0xff]   ;;  %v2047_v13 = vld [vmem:[%s2803_s1 + $0x48] ss:$16 sps:$4 sm:$0xff]  }
  0x2c   :  { %v2051_v14 = vld [vmem:[%s2803_s1 + $0x6c] ss:$16 sps:$4 sm:$0xff]   ;;  %v2050_v15 = vld [vmem:[%s2803_s1 + $0x60] ss:$16 sps:$4 sm:$0xff]   ;;  %v2053_v18 = vld [vmem:[%s2803_s1 + $0x68] ss:$16 sps:$4 sm:$0xff]  }
  0x2d   :  { %v62_v16 = vld [vmem:[%s2802_s0] sm:$0xff]  ;;  %vm204_vm0 = vcmask 523264   ;;  %v2059_v22 = vld [vmem:[#allocation2 + $0x14] ss:$8 sps:$4 sm:$0xff]   ;;  %v2057_v25 = vld [vmem:[#allocation2 + $0x10] ss:$8 sps:$4 sm:$0xff]  }
  0x2e   :  { %232 = vmatpush1.bf16.msra.mxu0 %v2038_v6  ;;  %345 = vmatpush1.bf16.msra.mxu1 %v2041_v8  ;;  %v78_v19 = vpack.c.bf16 %v63_v17, %v62_v16  ;;  %v2054_v20 = vld [vmem:[#allocation2] ss:$8 sps:$4 sm:$0xff]   ;;  %v2056_v21 = vld [vmem:[#allocation2 + $0x4] ss:$8 sps:$4 sm:$0xff]   ;;  %v64_v23 = vld [vmem:[%s2802_s0 + $0x10] sm:$0xff]  ;;  %vm2246_vm1 = vmmov 0  }
  0x2f   :  { %233 = vmatprep.subr.bf16.mxu0 %v2042_v9  ;;  %346 = vmatprep.subr.bf16.mxu1 %v2045_v11  ;;  %v65_v24 = vld [vmem:[%s2802_s0 + $0x18] sm:$0xff]  ;;  %v2062_v26 = vld [vmem:[#allocation2 + $0x24] ss:$8 sps:$4 sm:$0xff]   ;;  %v2060_v28 = vld [vmem:[#allocation2 + $0x20] ss:$8 sps:$4 sm:$0xff]   ;;  %s2248_s14 = smov [#allocation7]  }
  0x30   :  { %v79_v27 = vpack.c.bf16 %v65_v24, %v64_v23  ;;  %v2065_v29 = vld [vmem:[#allocation2 + $0x34] ss:$8 sps:$4 sm:$0xff]   ;;  %v66_v30 = vld [vmem:[%s2802_s0 + $0x20] sm:$0xff]  ;;  %v67_v31 = vld [vmem:[%s2802_s0 + $0x28] sm:$0xff]  ;;  %s1660_s15 = sshll.u32 %s2248_s14, 4  ;;  %s1661_s15 = int_to_ptr.vmem [resolvable:$true] %s1660_s15 }
  0x31   :  { %v2063_v32 = vld [vmem:[#allocation2 + $0x30] ss:$8 sps:$4 sm:$0xff]   ;;  %v2068_v33 = vld [vmem:[#allocation2 + $0x44] ss:$8 sps:$4 sm:$0xff]   ;;  %v2398_v34 = vld [vmem:[#allocation2 + $0x100] ss:$8 sps:$4 sm:$0xff]   ;;  %v80_v36 = vpack.c.bf16 %v67_v31, %v66_v30  ;;  %p2215_p3 = scmp.lt.s32.totalorder %s1661_s15, %s1661_s15 }
  0x32   :  { %234 = vmatpush1.bf16.msra.mxu0 %v2044_v10  ;;  %347 = vmatpush1.bf16.msra.mxu1 %v2047_v13  ;;  %v2401_v35 = vld [vmem:[#allocation2 + $0x104] ss:$8 sps:$4 sm:$0xff]   ;;  %v2404_v37 = vld [vmem:[#allocation2 + $0x114] ss:$8 sps:$4 sm:$0xff]   ;;  %v2066_v38 = vld [vmem:[#allocation2 + $0x40] ss:$8 sps:$4 sm:$0xff]  }
  0x33   :  { %235 = vmatprep.subr.bf16.mxu0 %v2048_v12  ;;  %348 = vmatprep.subr.bf16.mxu1 %v2051_v14  ;;  %v2071_v39 = vld [vmem:[#allocation2 + $0x54] ss:$8 sps:$4 sm:$0xff]   ;;  %v2412_v41 = vld [vmem:[#allocation2 + $0x110] ss:$8 sps:$4 sm:$0xff]   ;;  %v2418_v43 = vld [vmem:[#allocation2 + $0x124] ss:$8 sps:$4 sm:$0xff]  }
  0x34   :  { %v68_v40 = vld [vmem:[%s2802_s0 + $0x30] sm:$0xff]  ;;  %v69_v42 = vld [vmem:[%s2802_s0 + $0x38] sm:$0xff]  ;;  %v2074_v45 = vld [vmem:[#allocation2 + $0x64] ss:$8 sps:$4 sm:$0xff]   ;;  %s2210_s16 = scalar_lea.vmem %s1661_s15, 16  ;;  %s2214_s17 = scalar_lea.vmem %s1661_s15, 32 }
  0x35   :  { %v2069_v44 = vld [vmem:[#allocation2 + $0x50] ss:$8 sps:$4 sm:$0xff]   ;;  %v81_v46 = vpack.c.bf16 %v69_v42, %v68_v40  ;;  %v2072_v47 = vld [vmem:[#allocation2 + $0x60] ss:$8 sps:$4 sm:$0xff]   ;;  %v2077_v49 = vld [vmem:[#allocation2 + $0x74] ss:$8 sps:$4 sm:$0xff]   ;;  %p2211_p2 = scmp.ne.s32.totalorder %s1661_s15, %s2210_s16  ;;  %p2216_p4 = scmp.lt.s32.totalorder %s2214_s17, %s2210_s16 }
  0x36   :  { %236 = vmatpush1.bf16.msra.mxu0 %v2050_v15  ;;  %349 = vmatpush1.bf16.msra.mxu1 %v2053_v18  ;;  %v2423_v48 = vld [vmem:[#allocation2 + $0x120] ss:$8 sps:$4 sm:$0xff]   ;;  %v2426_v50 = vld [vmem:[#allocation2 + $0x134] ss:$8 sps:$4 sm:$0xff]   ;;  %v2428_v51 = vld [vmem:[#allocation2 + $0x130] ss:$8 sps:$4 sm:$0xff]  }
  0x37   :  { %1011 = vmatprep.subr.bf16.mxu0 %v2056_v21  ;;  %1923 = vmatprep.subr.bf16.mxu1 %v2401_v35  ;;  %v70_v52 = vld [vmem:[%s2802_s0 + $0x40] sm:$0xff]  ;;  %v71_v53 = vld [vmem:[%s2802_s0 + $0x48] sm:$0xff]  ;;  %v2075_v55 = vld [vmem:[#allocation2 + $0x70] ss:$8 sps:$4 sm:$0xff]   ;;  %p2217_p5 = por %p2216_p4, %p2215_p3 }
  0x38   :  { %v2436_v54 = vld [vmem:[#allocation2 + $0x144] ss:$8 sps:$4 sm:$0xff]   ;;  %v2443_v57 = vld [vmem:[#allocation2 + $0x140] ss:$8 sps:$4 sm:$0xff]   ;;  %v82_v58 = vpack.c.bf16 %v71_v53, %v70_v52  ;;  %v2086_v60 = vld [vmem:[#allocation2 + $0x94] ss:$8 sps:$4 sm:$0xff]  }
  0x39   :  { %1686 = vmatmul.mubr.msk.bf16.vlgmr.msra.gmra.mrb[0].mxu0 %vm204_vm0, %v78_v19  ;;  %1694 = vmatmul.mubr.msk.bf16.vlgmr.msra.gmra.mrb[0].mxu1 %vm204_vm0, %v78_v19  ;;  %v2080_v56 = vld [vmem:[#allocation2 + $0x84] ss:$8 sps:$4 sm:$0xff]   ;;  %v2078_v59 = vld [vmem:[#allocation2 + $0x80] ss:$8 sps:$4 sm:$0xff]   ;;  %v72_v61 = vld [vmem:[%s2802_s0 + $0x50] sm:$0xff]  ;;  %p2218_p6 = pnand %p2217_p5, %p2211_p2 }
  0x3a   :  { %271 = vmatprep.mubr.bf16.mxu0 %v2244_v0  ;;  %1012 = vmatpush1.bf16.msra.mxu0 %v2054_v20  ;;  %v73_v62 = vld [vmem:[%s2802_s0 + $0x58] sm:$0xff]  ;;  %v2092_v1 = vld [vmem:[#allocation2 + $0xa4] ss:$8 sps:$4 sm:$0xff]   ;;  %v2090_v3 = vld [vmem:[#allocation2 + $0xa0] ss:$8 sps:$4 sm:$0xff]  }
  0x3b   :  { %384 = vmatprep.mubr.bf16.mxu1 %v2244_v0  ;;  %1013 = vmatprep.subr.bf16.mxu0 %v2059_v22  ;;  %v2084_v63 = vld [vmem:[#allocation2 + $0x90] ss:$8 sps:$4 sm:$0xff]   ;;  %v83_v2 = vpack.c.bf16 %v73_v62, %v72_v61  ;;  %v2098_v4 = vld [vmem:[#allocation2 + $0xb4] ss:$8 sps:$4 sm:$0xff]   ;;  %v74_v5 = vld [vmem:[%s2802_s0 + $0x60] sm:$0xff] }
  0x3c   :  { %1939 = vmatpush1.bf16.msra.mxu1 %v2398_v34  ;;  %v75_v6 = vld [vmem:[%s2802_s0 + $0x68] sm:$0xff]  ;;  %v2096_v7 = vld [vmem:[#allocation2 + $0xb0] ss:$8 sps:$4 sm:$0xff]   ;;  %v2110_v14 = vld [vmem:[#allocation2 + $0xd4] ss:$8 sps:$4 sm:$0xff]  }
  0x3d   :  { %1924 = vmatprep.subr.bf16.mxu1 %v2404_v37  ;;  %v2104_v8 = vld [vmem:[#allocation2 + $0xc4] ss:$8 sps:$4 sm:$0xff]   ;;  %v84_v9 = vpack.c.bf16 %v75_v6, %v74_v5  ;;  %v2102_v10 = vld [vmem:[#allocation2 + $0xc0] ss:$8 sps:$4 sm:$0xff]   ;;  %v76_v11 = vld [vmem:[%s2802_s0 + $0x70] sm:$0xff] }
  0x3e   :  { %1014 = vmatpush1.bf16.msra.mxu0 %v2057_v25  ;;  %v77_v12 = vld [vmem:[%s2802_s0 + $0x78] sm:$0xff]  ;;  %v2116_v18 = vld [vmem:[#allocation2 + $0xe4] ss:$8 sps:$4 sm:$0xff]   ;;  %v2114_v19 = vld [vmem:[#allocation2 + $0xe0] ss:$8 sps:$4 sm:$0xff]  }
  0x3f   :  { %1015 = vmatprep.subr.bf16.mxu0 %v2062_v26  ;;  %v85_v13 = vpack.c.bf16 %v77_v12, %v76_v11  ;;  %v2108_v15 = vld [vmem:[#allocation2 + $0xd0] ss:$8 sps:$4 sm:$0xff]   ;;  %v2481_v16 = vld [vmem:[#allocation2 + $0x154] ss:$8 sps:$4 sm:$0xff]   ;;  %v2489_v20 = vld [vmem:[#allocation2 + $0x160] ss:$8 sps:$4 sm:$0xff]  }
  0x40   :  { %1940 = vmatpush1.bf16.msra.mxu1 %v2412_v41  ;;  %v2483_v17 = vld [vmem:[#allocation2 + $0x150] ss:$8 sps:$4 sm:$0xff]   ;;  %v2122_v21 = vld [vmem:[#allocation2 + $0xf4] ss:$8 sps:$4 sm:$0xff]   ;;  %v2500_v25 = vld [vmem:[#allocation2 + $0x184] ss:$8 sps:$4 sm:$0xff]  }
  0x41   :  { %1687 = vmatmul.mubr.msk.bf16.gmra.mrb[4].mxu0 %vm204_vm0, %v79_v27  ;;  %1695 = vmatmul.mubr.msk.bf16.gmra.mrb[4].mxu1 %vm204_vm0, %v79_v27  ;;  %v2120_v22 = vld [vmem:[#allocation2 + $0xf0] ss:$8 sps:$4 sm:$0xff]   ;;  %v2493_v23 = vld [vmem:[#allocation2 + $0x174] ss:$8 sps:$4 sm:$0xff]   ;;  %v2502_v26 = vld [vmem:[#allocation2 + $0x180] ss:$8 sps:$4 sm:$0xff]  }
  0x42   :  { %281 = vmatprep.mubr.bf16.mxu0 %v2244_v0  ;;  %1016 = vmatpush1.bf16.msra.mxu0 %v2060_v28  ;;  %v2495_v24 = vld [vmem:[#allocation2 + $0x170] ss:$8 sps:$4 sm:$0xff]   ;;  %v2506_v27 = vld [vmem:[#allocation2 + $0x194] ss:$8 sps:$4 sm:$0xff]   ;;  %v2514_v30 = vld [vmem:[#allocation2 + $0x1a0] ss:$8 sps:$4 sm:$0xff]  }
  0x43   :  { %394 = vmatprep.mubr.bf16.mxu1 %v2244_v0  ;;  %1017 = vmatprep.subr.bf16.mxu0 %v2065_v29  ;;  %v2508_v28 = vld [vmem:[#allocation2 + $0x190] ss:$8 sps:$4 sm:$0xff]   ;;  %v2512_v29 = vld [vmem:[#allocation2 + $0x1a4] ss:$8 sps:$4 sm:$0xff]   ;;  %v2518_v31 = vld [vmem:[#allocation2 + $0x1b4] ss:$8 sps:$4 sm:$0xff]  }
  0x44   :  { %1925 = vmatprep.subr.bf16.mxu1 %v2418_v43  ;;  %v2538_v40 = vld [vmem:[#allocation2 + $0x1e0] ss:$8 sps:$4 sm:$0xff]   ;;  %v2542_v42 = vld [vmem:[#allocation2 + $0x1f4] ss:$8 sps:$4 sm:$0xff]  }
  0x45   :  { %1941 = vmatpush1.bf16.msra.mxu1 %v2423_v48  ;;  %2819 = vst [vmem:[#allocation11_spill] sm:$0xff] %v2538_v40  ;;  %2820 = vst [vmem:[#allocation12_spill] sm:$0xff] %v2542_v42 }
  0x46   :  { %1018 = vmatpush1.bf16.msra.mxu0 %v2063_v32  ;;  %1926 = vmatprep.subr.bf16.mxu1 %v2426_v50  ;;  %v2520_v32 = vld [vmem:[#allocation2 + $0x1b0] ss:$8 sps:$4 sm:$0xff]  }
  0x47   :  { %1019 = vmatprep.subr.bf16.mxu0 %v2068_v33  ;;  %v2524_v33 = vld [vmem:[#allocation2 + $0x1c4] ss:$8 sps:$4 sm:$0xff]  }
  0x49   :  { %1688 = vmatmul.mubr.msk.bf16.gmra.mrb[8].mxu0 %vm204_vm0, %v80_v36  ;;  %1696 = vmatmul.mubr.msk.bf16.gmra.mrb[8].mxu1 %vm204_vm0, %v80_v36  ;;  %v2530_v36 = vld [vmem:[#allocation2 + $0x1d4] ss:$8 sps:$4 sm:$0xff]  }
  0x4a   :  { %291 = vmatprep.mubr.bf16.mxu0 %v2244_v0  ;;  %1020 = vmatpush1.bf16.msra.mxu0 %v2066_v38  ;;  %v2532_v38 = vld [vmem:[#allocation2 + $0x1d0] ss:$8 sps:$4 sm:$0xff]  }
  0x4b   :  { %404 = vmatprep.mubr.bf16.mxu1 %v2244_v0  ;;  %1021 = vmatprep.subr.bf16.mxu0 %v2071_v39  ;;  %v2536_v39 = vld [vmem:[#allocation2 + $0x1e4] ss:$8 sps:$4 sm:$0xff]  }
  0x4c   :  { %1942 = vmatpush1.bf16.msra.mxu1 %v2428_v51 }
  0x4d   :  { %1927 = vmatprep.subr.bf16.mxu1 %v2436_v54 }
  0x4e   :  { %1022 = vmatpush1.bf16.msra.mxu0 %v2069_v44  ;;  %v2544_v44 = vld [vmem:[#allocation2 + $0x1f0] ss:$8 sps:$4 sm:$0xff]  }
  0x4f   :  { %1023 = vmatprep.subr.bf16.mxu0 %v2074_v45  ;;  %2821 = vst [vmem:[#allocation13_spill] sm:$0xff] %v2544_v44  ;;  %v104_v45 = vlaneseq }
  0x50   :  { %1943 = vmatpush1.bf16.msra.mxu1 %v2443_v57 }
  0x51   :  { %1689 = vmatmul.mubr.msk.bf16.gmra.mrb[12].mxu0 %vm204_vm0, %v81_v46  ;;  %1697 = vmatmul.mubr.msk.bf16.gmra.mrb[12].mxu1 %vm204_vm0, %v81_v46  ;;  %v2548_v46 = vshrl.u32 %v104_v45, 7 }
  0x52   :  { %301 = vmatprep.mubr.bf16.mxu0 %v2244_v0  ;;  %1024 = vmatpush1.bf16.msra.mxu0 %v2072_v47 }
  0x53   :  { %414 = vmatprep.mubr.bf16.mxu1 %v2244_v0  ;;  %1025 = vmatprep.subr.bf16.mxu0 %v2077_v49  ;;  %2822 = vst [vmem:[#allocation14_spill] sm:$0xff] %v2548_v46  ;;  %v2813_v47 = vsub.s32 0, %v2548_v46  ;;  %v102_v49 = vld [vmem:[%s2804_s2] sm:$0xf]  ;;  %v2812_v52 = vsub.s32 1, %v2548_v46 }
  0x54   :  { %1928 = vmatprep.subr.bf16.mxu1 %v2481_v16 }
  0x55   :  { %1944 = vmatpush1.bf16.msra.mxu1 %v2483_v17  ;;  %v2557_v53 = vrot.slane %v102_v49, %v2813_v47 }
  0x56   :  { %1026 = vmatpush1.bf16.msra.mxu0 %v2075_v55  ;;  %v114_v55 = vsub.s32 2, %v2548_v46 }
  0x57   :  { %1027 = vmatprep.subr.bf16.mxu0 %v2080_v56  ;;  %v2562_v56 = vrot.slane %v102_v49, %v2812_v52 }
  0x58   :  { %v2566_v62 = vrot.slane %v102_v49, %v114_v55 }
  0x59   :  { %1690 = vmatmul.mubr.msk.bf16.gmra.mrb[16].mxu0 %vm204_vm0, %v82_v58  ;;  %1698 = vmatmul.mubr.msk.bf16.gmra.mrb[16].mxu1 %vm204_vm0, %v82_v58  ;;  %v118_v58 = vsub.s32 3, %v2548_v46 }
  0x5a   :  { %311 = vmatprep.mubr.bf16.mxu0 %v2244_v0  ;;  %1028 = vmatpush1.bf16.msra.mxu0 %v2078_v59 }
  0x5b   :  { %424 = vmatprep.mubr.bf16.mxu1 %v2244_v0  ;;  %1029 = vmatprep.subr.bf16.mxu0 %v2086_v60 }
  0x5e   :  { %1030 = vmatpush1.bf16.msra.mxu0 %v2084_v63 }
  0x5f   :  { %1031 = vmatprep.subr.bf16.mxu0 %v2092_v1 }
  0x61   :  { %1691 = vmatmul.mubr.msk.bf16.gmra.mrb[20].mxu0 %vm204_vm0, %v83_v2  ;;  %1699 = vmatmul.mubr.msk.bf16.gmra.mrb[20].mxu1 %vm204_vm0, %v83_v2 }
  0x62   :  { %321 = vmatprep.mubr.bf16.mxu0 %v2244_v0  ;;  %1032 = vmatpush1.bf16.msra.mxu0 %v2090_v3  ;;  %v2569_v3 = vrot.slane %v102_v49, %v118_v58 }
  0x63   :  { %434 = vmatprep.mubr.bf16.mxu1 %v2244_v0  ;;  %1033 = vmatprep.subr.bf16.mxu0 %v2098_v4 }
  0x66   :  { %1034 = vmatpush1.bf16.msra.mxu0 %v2096_v7 }
  0x67   :  { %1035 = vmatprep.subr.bf16.mxu0 %v2104_v8 }
  0x69   :  { %1692 = vmatmul.mubr.msk.bf16.gmra.mrb[24].mxu0 %vm204_vm0, %v84_v9  ;;  %1700 = vmatmul.mubr.msk.bf16.gmra.mrb[24].mxu1 %vm204_vm0, %v84_v9 }
  0x6a   :  { %331 = vmatprep.mubr.bf16.mxu0 %v2244_v0  ;;  %1036 = vmatpush1.bf16.msra.mxu0 %v2102_v10 }
  0x6b   :  { %444 = vmatprep.mubr.bf16.mxu1 %v2244_v0  ;;  %1037 = vmatprep.subr.bf16.mxu0 %v2110_v14  ;;  %v2487_v0 = vld [vmem:[#allocation2 + $0x164] ss:$8 sps:$4 sm:$0xff]  }
  0x6c   :  { %1929 = vmatprep.subr.bf16.mxu1 %v2487_v0 }
  0x6d   :  { %1945 = vmatpush1.bf16.msra.mxu1 %v2489_v20 }
  0x6e   :  { %1038 = vmatpush1.bf16.msra.mxu0 %v2108_v15  ;;  %1930 = vmatprep.subr.bf16.mxu1 %v2493_v23 }
  0x6f   :  { %1039 = vmatprep.subr.bf16.mxu0 %v2116_v18 }
  0x71   :  { %1693 = vmatmul.mubr.msk.bf16.gmra.mrb[28].mxu0 %vm204_vm0, %v85_v13  ;;  %1701 = vmatmul.mubr.msk.bf16.gmra.mrb[28].mxu1 %vm204_vm0, %v85_v13 }
  0x72   :  { %1040 = vmatpush1.bf16.msra.mxu0 %v2114_v19  ;;  %1946 = vmatpush1.bf16.msra.mxu1 %v2495_v24 }
  0x73   :  { %1041 = vmatprep.subr.bf16.mxu0 %v2122_v21  ;;  %1931 = vmatprep.subr.bf16.mxu1 %v2500_v25 }
  0x76   :  { %1042 = vmatpush1.bf16.msra.mxu0 %v2120_v22  ;;  %1947 = vmatpush1.bf16.msra.mxu1 %v2502_v26 }
  0x77   :  { %1124 = vmatprep.subr.bf16.mxu0 %v2401_v35  ;;  %1932 = vmatprep.subr.bf16.mxu1 %v2506_v27  ;;  %v2526_v35 = vld [vmem:[#allocation2 + $0x1c0] ss:$8 sps:$4 sm:$0xff]  }
  0x7a   :  { %1948 = vmatpush1.bf16.msra.mxu1 %v2508_v28 }
  0x7b   :  { %1933 = vmatprep.subr.bf16.mxu1 %v2512_v29 }
  0x7e   :  { %1949 = vmatpush1.bf16.msra.mxu1 %v2514_v30 }
  0x7f   :  { %1934 = vmatprep.subr.bf16.mxu1 %v2518_v31 }
  0x82   :  { %1950 = vmatpush1.bf16.msra.mxu1 %v2520_v32 }
  0x83   :  { %1935 = vmatprep.subr.bf16.mxu1 %v2524_v33 }
  0x86   :  { %1951 = vmatpush1.bf16.msra.mxu1 %v2526_v35 }
  0x87   :  { %1936 = vmatprep.subr.bf16.mxu1 %v2530_v36 }
  0x8a   :  { %1952 = vmatpush1.bf16.msra.mxu1 %v2532_v38 }
  0x8b   :  { %1937 = vmatprep.subr.bf16.mxu1 %v2536_v39 }
  0x8e   :  { %1953 = vmatpush1.bf16.msra.mxu1 %v2538_v40 }
  0x8f   :  { %1938 = vmatprep.subr.bf16.mxu1 %v2542_v42 }
  0x92   :  { %1954 = vmatpush1.bf16.msra.mxu1 %v2544_v44 }
 0x10c   :  { %v263_v59 = vpop.f32.mrb[0].mxu0  ;;  %v376_v2 = vpop.f32.mrb[0].mxu1 }
 0x10d   :  { %v264_v60 = vadd.f32 %v263_v59, %v2557_v53  ;;  %v265_v61 = vpop.f32.mrb[1].mxu0  ;;  %v377_v7 = vadd.f32 %v376_v2, %v2566_v62  ;;  %v378_v8 = vpop.f32.mrb[1].mxu1 }
 0x10e   :  { %v266_v63 = vadd.f32 %v265_v61, %v2562_v56  ;;  %v267_v1 = vpop.f32.mrb[2].mxu0  ;;  %v379_v11 = vadd.f32 %v378_v8, %v2569_v3  ;;  %v380_v12 = vpop.f32.mrb[2].mxu1 }
 0x10f   :  { %v455_v4 = vmul.f32 0.2, %v264_v60  ;;  %v268_v5 = vadd.f32 %v267_v1, %v2557_v53  ;;  %v269_v6 = vpop.f32.mrb[3].mxu0  ;;  %v457_v14 = vmul.f32 0.2, %v377_v7  ;;  %v381_v15 = vadd.f32 %v380_v12, %v2566_v62  ;;  %v382_v18 = vpop.f32.mrb[3].mxu1 }
 0x110   :  { %v456_v9 = vmul.f32 0.2, %v266_v63  ;;  %v270_v10 = vadd.f32 %v269_v6, %v2562_v56  ;;  %v458_v21 = vmul.f32 0.2, %v379_v11  ;;  %v383_v22 = vadd.f32 %v382_v18, %v2569_v3 }
 0x111   :  { %v459_v13 = vmul.f32 0.2, %v268_v5  ;;  %v519_v45 = vmax.f32 %v264_v60, %v455_v4  ;;  %v521_v55 = vmax.f32 %v377_v7, %v457_v14  ;;  %v461_v58 = vmul.f32 0.2, %v381_v15 }
 0x112   :  { %v460_v19 = vmul.f32 0.2, %v270_v10  ;;  %v520_v59 = vmax.f32 %v266_v63, %v456_v9  ;;  %v522_v2 = vmax.f32 %v379_v11, %v458_v21  ;;  %v462_v6 = vmul.f32 0.2, %v383_v22 }
 0x113   :  { %v523_v49 = vmax.f32 %v268_v5, %v459_v13  ;;  %v525_v46 = vmax.f32 %v381_v15, %v461_v58 }
 0x114   :  { %v524_v61 = vmax.f32 %v270_v10, %v460_v19  ;;  %v273_v1 = vpop.f32.mrb[4].mxu0  ;;  %v526_v40 = vmax.f32 %v383_v22, %v462_v6  ;;  %v386_v18 = vpop.f32.mrb[4].mxu1 }
 0x115   :  { %v583_v8 = vpack.c.bf16 %v523_v49, %v519_v45  ;;  %v274_v52 = vadd.f32 %v273_v1, %v2557_v53  ;;  %v275_v47 = vpop.f32.mrb[5].mxu0  ;;  %v2580_v63 = vpack.c.bf16 %v525_v46, %v521_v55  ;;  %v387_v7 = vadd.f32 %v386_v18, %v2566_v62  ;;  %v388_v9 = vpop.f32.mrb[5].mxu1 }
 0x116   :  { %v276_v12 = vadd.f32 %v275_v47, %v2562_v56  ;;  %v277_v44 = vpop.f32.mrb[6].mxu0  ;;  %v584_v42 = vpack.c.bf16 %v524_v61, %v520_v59  ;;  %v389_v13 = vadd.f32 %v388_v9, %v2569_v3  ;;  %v390_v47 = vpop.f32.mrb[6].mxu1  ;;  %v2585_v14 = vpack.c.bf16 %v526_v40, %v522_v2 }
 0x117   :  { %v463_v60 = vmul.f32 0.2, %v274_v52  ;;  %v278_v4 = vadd.f32 %v277_v44, %v2557_v53  ;;  %v279_v5 = vpop.f32.mrb[7].mxu0  ;;  %v465_v19 = vmul.f32 0.2, %v387_v7  ;;  %v391_v44 = vadd.f32 %v390_v47, %v2566_v62  ;;  %v392_v21 = vpop.f32.mrb[7].mxu1 }
 0x118   :  { %v464_v10 = vmul.f32 0.2, %v276_v12  ;;  %v280_v11 = vadd.f32 %v279_v5, %v2562_v56  ;;  %1043 = vmatprep.mubr.bf16.mxu0 %v584_v42  ;;  %v466_v22 = vmul.f32 0.2, %v389_v13  ;;  %v393_v45 = vadd.f32 %v392_v21, %v2569_v3 }
 0x119   :  { %v467_v15 = vmul.f32 0.2, %v278_v4  ;;  %1044 = vmatmul.mubr.bf16.vlgmr.msra.gmra.mrb[32].mxu0 %v583_v8  ;;  %v527_v49 = vmax.f32 %v274_v52, %v463_v60  ;;  %v529_v42 = vmax.f32 %v387_v7, %v465_v19  ;;  %v469_v58 = vmul.f32 0.2, %v391_v44 }
 0x11a   :  { %v468_v46 = vmul.f32 0.2, %v280_v11  ;;  %1125 = vmatpush1.bf16.msra.mxu0 %v2398_v34  ;;  %v528_v40 = vmax.f32 %v276_v12, %v464_v10  ;;  %v530_v1 = vmax.f32 %v389_v13, %v466_v22  ;;  %v470_v2 = vmul.f32 0.2, %v393_v45 }
 0x11b   :  { %v531_v55 = vmax.f32 %v278_v4, %v467_v15  ;;  %1126 = vmatprep.subr.bf16.mxu0 %v2404_v37  ;;  %v533_v5 = vmax.f32 %v391_v44, %v469_v58 }
 0x11c   :  { %v532_v59 = vmax.f32 %v280_v11, %v468_v46  ;;  %v283_v61 = vpop.f32.mrb[8].mxu0  ;;  %v534_v60 = vmax.f32 %v393_v45, %v470_v2  ;;  %v396_v37 = vpop.f32.mrb[8].mxu1 }
 0x11d   :  { %v284_v6 = vadd.f32 %v283_v61, %v2557_v53  ;;  %v285_v8 = vpop.f32.mrb[9].mxu0  ;;  %v587_v18 = vpack.c.bf16 %v531_v55, %v527_v49  ;;  %v397_v10 = vadd.f32 %v396_v37, %v2566_v62  ;;  %v398_v11 = vpop.f32.mrb[9].mxu1  ;;  %v2597_v13 = vpack.c.bf16 %v533_v5, %v529_v42 }
 0x11e   :  { %v286_v34 = vadd.f32 %v285_v8, %v2562_v56  ;;  %v287_v9 = vpop.f32.mrb[10].mxu0  ;;  %1127 = vmatpush1.bf16.msra.mxu0 %v2412_v41  ;;  %v588_v52 = vpack.c.bf16 %v532_v59, %v528_v40  ;;  %v399_v41 = vadd.f32 %v398_v11, %v2569_v3  ;;  %v400_v19 = vpop.f32.mrb[10].mxu1  ;;  %v2601_v44 = vpack.c.bf16 %v534_v60, %v530_v1 }
 0x11f   :  { %v471_v4 = vmul.f32 0.2, %v284_v6  ;;  %v288_v12 = vadd.f32 %v287_v9, %v2557_v53  ;;  %v289_v7 = vpop.f32.mrb[11].mxu0  ;;  %1128 = vmatprep.subr.bf16.mxu0 %v2418_v43  ;;  %v473_v46 = vmul.f32 0.2, %v397_v10  ;;  %v401_v22 = vadd.f32 %v400_v19, %v2566_v62  ;;  %v402_v43 = vpop.f32.mrb[11].mxu1 }
 0x120   :  { %v472_v47 = vmul.f32 0.2, %v286_v34  ;;  %v290_v15 = vadd.f32 %v289_v7, %v2562_v56  ;;  %1053 = vmatprep.mubr.bf16.mxu0 %v588_v52  ;;  %v474_v49 = vmul.f32 0.2, %v399_v41  ;;  %v403_v55 = vadd.f32 %v402_v43, %v2569_v3 }
 0x121   :  { %v475_v21 = vmul.f32 0.2, %v288_v12  ;;  %1054 = vmatmul.mubr.bf16.gmra.mrb[36].mxu0 %v587_v18  ;;  %v535_v42 = vmax.f32 %v284_v6, %v471_v4  ;;  %v537_v40 = vmax.f32 %v397_v10, %v473_v46  ;;  %v477_v59 = vmul.f32 0.2, %v401_v22 }
 0x122   :  { %v476_v45 = vmul.f32 0.2, %v290_v15  ;;  %1129 = vmatpush1.bf16.msra.mxu0 %v2423_v48  ;;  %v536_v61 = vmax.f32 %v286_v34, %v472_v47  ;;  %v538_v8 = vmax.f32 %v399_v41, %v474_v49  ;;  %v478_v18 = vmul.f32 0.2, %v403_v55 }
 0x123   :  { %v539_v58 = vmax.f32 %v288_v12, %v475_v21  ;;  %1130 = vmatprep.subr.bf16.mxu0 %v2426_v50  ;;  %v541_v52 = vmax.f32 %v401_v22, %v477_v59 }
 0x124   :  { %v540_v1 = vmax.f32 %v290_v15, %v476_v45  ;;  %v293_v2 = vpop.f32.mrb[12].mxu0  ;;  %v542_v4 = vmax.f32 %v403_v55, %v478_v18  ;;  %v406_v50 = vpop.f32.mrb[12].mxu1 }
 0x125   :  { %v294_v5 = vadd.f32 %v293_v2, %v2557_v53  ;;  %v295_v9 = vpop.f32.mrb[13].mxu0  ;;  %v591_v60 = vpack.c.bf16 %v539_v58, %v535_v42  ;;  %v407_v10 = vadd.f32 %v406_v50, %v2566_v62  ;;  %v408_v11 = vpop.f32.mrb[13].mxu1  ;;  %v2613_v47 = vpack.c.bf16 %v541_v52, %v537_v40 }
 0x126   :  { %v296_v48 = vadd.f32 %v295_v9, %v2562_v56  ;;  %v297_v37 = vpop.f32.mrb[14].mxu0  ;;  %1131 = vmatpush1.bf16.msra.mxu0 %v2428_v51  ;;  %v592_v6 = vpack.c.bf16 %v540_v1, %v536_v61  ;;  %v409_v51 = vadd.f32 %v408_v11, %v2569_v3  ;;  %v410_v19 = vpop.f32.mrb[14].mxu1  ;;  %v2617_v21 = vpack.c.bf16 %v542_v4, %v538_v8 }
 0x127   :  { %v479_v12 = vmul.f32 0.2, %v294_v5  ;;  %v298_v34 = vadd.f32 %v297_v37, %v2557_v53  ;;  %v299_v7 = vpop.f32.mrb[15].mxu0  ;;  %1132 = vmatprep.subr.bf16.mxu0 %v2436_v54  ;;  %v481_v22 = vmul.f32 0.2, %v407_v10  ;;  %v411_v43 = vadd.f32 %v410_v19, %v2566_v62  ;;  %v412_v54 = vpop.f32.mrb[15].mxu1 }
 0x128   :  { %v480_v15 = vmul.f32 0.2, %v296_v48  ;;  %v300_v41 = vadd.f32 %v299_v7, %v2562_v56  ;;  %1063 = vmatprep.mubr.bf16.mxu0 %v592_v6  ;;  %v482_v49 = vmul.f32 0.2, %v409_v51  ;;  %v413_v55 = vadd.f32 %v412_v54, %v2569_v3 }
 0x129   :  { %v483_v46 = vmul.f32 0.2, %v298_v34  ;;  %1064 = vmatmul.mubr.bf16.gmra.mrb[40].mxu0 %v591_v60  ;;  %v543_v42 = vmax.f32 %v294_v5, %v479_v12  ;;  %v545_v40 = vmax.f32 %v407_v10, %v481_v22  ;;  %v485_v59 = vmul.f32 0.2, %v411_v43 }
 0x12a   :  { %v484_v45 = vmul.f32 0.2, %v300_v41  ;;  %1133 = vmatpush1.bf16.msra.mxu0 %v2443_v57  ;;  %v544_v61 = vmax.f32 %v296_v48, %v480_v15  ;;  %v546_v2 = vmax.f32 %v409_v51, %v482_v49  ;;  %v486_v18 = vmul.f32 0.2, %v413_v55 }
 0x12b   :  { %v547_v58 = vmax.f32 %v298_v34, %v483_v46  ;;  %1134 = vmatprep.subr.bf16.mxu0 %v2481_v16  ;;  %v549_v52 = vmax.f32 %v411_v43, %v485_v59 }
 0x12c   :  { %v548_v1 = vmax.f32 %v300_v41, %v484_v45  ;;  %v303_v8 = vpop.f32.mrb[16].mxu0  ;;  %v550_v6 = vmax.f32 %v413_v55, %v486_v18  ;;  %v416_v5 = vpop.f32.mrb[16].mxu1 }
 0x12d   :  { %v304_v9 = vadd.f32 %v303_v8, %v2557_v53  ;;  %v305_v60 = vpop.f32.mrb[17].mxu0  ;;  %v595_v37 = vpack.c.bf16 %v547_v58, %v543_v42  ;;  %v417_v48 = vadd.f32 %v416_v5, %v2566_v62  ;;  %v418_v7 = vpop.f32.mrb[17].mxu1  ;;  %v2629_v10 = vpack.c.bf16 %v549_v52, %v545_v40 }
 0x12e   :  { %v306_v57 = vadd.f32 %v305_v60, %v2562_v56  ;;  %v307_v4 = vpop.f32.mrb[18].mxu0  ;;  %1135 = vmatpush1.bf16.msra.mxu0 %v2483_v17  ;;  %v596_v50 = vpack.c.bf16 %v548_v1, %v544_v61  ;;  %v419_v41 = vadd.f32 %v418_v7, %v2569_v3  ;;  %v420_v51 = vpop.f32.mrb[18].mxu1  ;;  %v2633_v17 = vpack.c.bf16 %v550_v6, %v546_v2 }
 0x12f   :  { %v487_v12 = vmul.f32 0.2, %v304_v9  ;;  %v308_v16 = vadd.f32 %v307_v4, %v2557_v53  ;;  %v309_v34 = vpop.f32.mrb[19].mxu0  ;;  %1136 = vmatprep.subr.bf16.mxu0 %v2487_v0  ;;  %v489_v46 = vmul.f32 0.2, %v417_v48  ;;  %v421_v22 = vadd.f32 %v420_v51, %v2566_v62  ;;  %v422_v43 = vpop.f32.mrb[19].mxu1 }
 0x130   :  { %v488_v11 = vmul.f32 0.2, %v306_v57  ;;  %v310_v15 = vadd.f32 %v309_v34, %v2562_v56  ;;  %1073 = vmatprep.mubr.bf16.mxu0 %v596_v50  ;;  %v490_v45 = vmul.f32 0.2, %v419_v41  ;;  %v423_v0 = vadd.f32 %v422_v43, %v2569_v3 }
 0x131   :  { %v491_v19 = vmul.f32 0.2, %v308_v16  ;;  %1074 = vmatmul.mubr.bf16.gmra.mrb[44].mxu0 %v595_v37  ;;  %v551_v49 = vmax.f32 %v304_v9, %v487_v12  ;;  %v553_v42 = vmax.f32 %v417_v48, %v489_v46  ;;  %v493_v58 = vmul.f32 0.2, %v421_v22 }
 0x132   :  { %v492_v54 = vmul.f32 0.2, %v310_v15  ;;  %1137 = vmatpush1.bf16.msra.mxu0 %v2489_v20  ;;  %v552_v40 = vmax.f32 %v306_v57, %v488_v11  ;;  %v554_v61 = vmax.f32 %v419_v41, %v490_v45  ;;  %v494_v1 = vmul.f32 0.2, %v423_v0 }
 0x133   :  { %v555_v55 = vmax.f32 %v308_v16, %v491_v19  ;;  %1138 = vmatprep.subr.bf16.mxu0 %v2493_v23  ;;  %v557_v8 = vmax.f32 %v421_v22, %v493_v58 }
 0x134   :  { %v556_v59 = vmax.f32 %v310_v15, %v492_v54  ;;  %v313_v2 = vpop.f32.mrb[20].mxu0  ;;  %v558_v37 = vmax.f32 %v423_v0, %v494_v1  ;;  %v426_v9 = vpop.f32.mrb[20].mxu1 }
 0x135   :  { %v314_v18 = vadd.f32 %v313_v2, %v2557_v53  ;;  %v315_v52 = vpop.f32.mrb[21].mxu0  ;;  %v599_v60 = vpack.c.bf16 %v555_v55, %v551_v49  ;;  %v601_v5 = vpack.c.bf16 %v557_v8, %v553_v42  ;;  %v427_v50 = vadd.f32 %v426_v9, %v2566_v62  ;;  %v428_v16 = vpop.f32.mrb[21].mxu1 }
 0x136   :  { %v316_v6 = vadd.f32 %v315_v52, %v2562_v56  ;;  %v317_v20 = vpop.f32.mrb[22].mxu0  ;;  %1139 = vmatpush1.bf16.msra.mxu0 %v2495_v24  ;;  %v600_v4 = vpack.c.bf16 %v556_v59, %v552_v40  ;;  %v429_v7 = vadd.f32 %v428_v16, %v2569_v3  ;;  %v430_v11 = vpop.f32.mrb[22].mxu1  ;;  %v602_v15 = vpack.c.bf16 %v558_v37, %v554_v61 }
 0x137   :  { %v495_v23 = vmul.f32 0.2, %v314_v18  ;;  %v318_v57 = vadd.f32 %v317_v20, %v2557_v53  ;;  %v319_v12 = vpop.f32.mrb[23].mxu0  ;;  %1140 = vmatprep.subr.bf16.mxu0 %v2500_v25  ;;  %v497_v41 = vmul.f32 0.2, %v427_v50  ;;  %v431_v51 = vadd.f32 %v430_v11, %v2566_v62  ;;  %v432_v19 = vpop.f32.mrb[23].mxu1 }
 0x138   :  { %v496_v48 = vmul.f32 0.2, %v316_v6  ;;  %v320_v34 = vadd.f32 %v319_v12, %v2562_v56  ;;  %1083 = vmatprep.mubr.bf16.mxu0 %v600_v4  ;;  %v498_v22 = vmul.f32 0.2, %v429_v7  ;;  %v433_v43 = vadd.f32 %v432_v19, %v2569_v3  ;;  %1196 = vmatprep.mubr.bf16.mxu1 %v602_v15 }
 0x139   :  { %v499_v24 = vmul.f32 0.2, %v318_v57  ;;  %1084 = vmatmul.mubr.bf16.gmra.mrb[48].mxu0 %v599_v60  ;;  %v559_v25 = vmax.f32 %v314_v18, %v495_v23  ;;  %v561_v45 = vmax.f32 %v427_v50, %v497_v41  ;;  %v501_v0 = vmul.f32 0.2, %v431_v51  ;;  %1197 = vmatmul.mubr.bf16.vlgmr.msra.gmra.mrb[32].mxu1 %v601_v5 }
 0x13a   :  { %v500_v46 = vmul.f32 0.2, %v320_v34  ;;  %1141 = vmatpush1.bf16.msra.mxu0 %v2502_v26  ;;  %v560_v49 = vmax.f32 %v316_v6, %v496_v48  ;;  %v562_v42 = vmax.f32 %v429_v7, %v498_v22  ;;  %v502_v58 = vmul.f32 0.2, %v433_v43 }
 0x13b   :  { %v563_v54 = vmax.f32 %v318_v57, %v499_v24  ;;  %1142 = vmatprep.subr.bf16.mxu0 %v2506_v27  ;;  %v565_v59 = vmax.f32 %v431_v51, %v501_v0 }
 0x13c   :  { %v564_v55 = vmax.f32 %v320_v34, %v500_v46  ;;  %v323_v40 = vpop.f32.mrb[24].mxu0  ;;  %v566_v8 = vmax.f32 %v433_v43, %v502_v58  ;;  %v436_v52 = vpop.f32.mrb[24].mxu1 }
 0x13d   :  { %v324_v61 = vadd.f32 %v323_v40, %v2557_v53  ;;  %v325_v1 = vpop.f32.mrb[25].mxu0  ;;  %v603_v2 = vpack.c.bf16 %v563_v54, %v559_v25  ;;  %v437_v6 = vadd.f32 %v436_v52, %v2566_v62  ;;  %v438_v9 = vpop.f32.mrb[25].mxu1  ;;  %v605_v4 = vpack.c.bf16 %v565_v59, %v561_v45 }
 0x13e   :  { %v326_v26 = vadd.f32 %v325_v1, %v2562_v56  ;;  %v327_v18 = vpop.f32.mrb[26].mxu0  ;;  %1143 = vmatpush1.bf16.msra.mxu0 %v2508_v28  ;;  %v604_v60 = vpack.c.bf16 %v564_v55, %v560_v49  ;;  %v439_v57 = vadd.f32 %v438_v9, %v2569_v3  ;;  %v440_v50 = vpop.f32.mrb[26].mxu1  ;;  %v606_v12 = vpack.c.bf16 %v566_v8, %v562_v42 }
 0x13f   :  { %v503_v37 = vmul.f32 0.2, %v324_v61  ;;  %v328_v27 = vadd.f32 %v327_v18, %v2557_v53  ;;  %v329_v20 = vpop.f32.mrb[27].mxu0  ;;  %1144 = vmatprep.subr.bf16.mxu0 %v2512_v29  ;;  %v505_v16 = vmul.f32 0.2, %v437_v6  ;;  %v441_v48 = vadd.f32 %v440_v50, %v2566_v62  ;;  %v442_v34 = vpop.f32.mrb[27].mxu1 }
 0x140   :  { %v504_v5 = vmul.f32 0.2, %v326_v26  ;;  %v330_v23 = vadd.f32 %v329_v20, %v2562_v56  ;;  %1093 = vmatprep.mubr.bf16.mxu0 %v604_v60  ;;  %v506_v11 = vmul.f32 0.2, %v439_v57  ;;  %v443_v15 = vadd.f32 %v442_v34, %v2569_v3  ;;  %1206 = vmatprep.mubr.bf16.mxu1 %v606_v12 }
 0x141   :  { %v507_v28 = vmul.f32 0.2, %v328_v27  ;;  %1094 = vmatmul.mubr.bf16.gmra.mrb[52].mxu0 %v603_v2  ;;  %v567_v29 = vmax.f32 %v324_v61, %v503_v37  ;;  %v569_v41 = vmax.f32 %v437_v6, %v505_v16  ;;  %v509_v51 = vmul.f32 0.2, %v441_v48  ;;  %1207 = vmatmul.mubr.bf16.gmra.mrb[36].mxu1 %v605_v4 }
 0x142   :  { %v508_v7 = vmul.f32 0.2, %v330_v23  ;;  %1145 = vmatpush1.bf16.msra.mxu0 %v2514_v30  ;;  %v568_v19 = vmax.f32 %v326_v26, %v504_v5  ;;  %v570_v22 = vmax.f32 %v439_v57, %v506_v11  ;;  %v510_v43 = vmul.f32 0.2, %v443_v15  ;;  %v2825_v11 = vld [vmem:[#allocation13_spill] sm:$0xff] }
 0x143   :  { %v571_v24 = vmax.f32 %v328_v27, %v507_v28  ;;  %1146 = vmatprep.subr.bf16.mxu0 %v2518_v31  ;;  %v573_v54 = vmax.f32 %v441_v48, %v509_v51  ;;  %v2164_v51 = vld [vmem:[#allocation5 + $0x78] sm:$0xff]  }
 0x144   :  { %v572_v46 = vmax.f32 %v330_v23, %v508_v7  ;;  %v333_v25 = vpop.f32.mrb[28].mxu0  ;;  %v574_v55 = vmax.f32 %v443_v15, %v510_v43  ;;  %v446_v58 = vpop.f32.mrb[28].mxu1  ;;  %v2823_v7 = vld [vmem:[#allocation11_spill] sm:$0xff] }
 0x145   :  { %v334_v45 = vadd.f32 %v333_v25, %v2557_v53  ;;  %v335_v0 = vpop.f32.mrb[29].mxu0  ;;  %v607_v49 = vpack.c.bf16 %v571_v24, %v567_v29  ;;  %v447_v61 = vadd.f32 %v446_v58, %v2566_v62  ;;  %v448_v2 = vpop.f32.mrb[29].mxu1  ;;  %v609_v8 = vpack.c.bf16 %v573_v54, %v569_v41  ;;  %v2153_v15 = vld [vmem:[#allocation5 + $0x8] sm:$0xff]   ;;  %v2162_v24 = vld [vmem:[#allocation5 + $0x70] sm:$0xff]  }
 0x146   :  { %v336_v30 = vadd.f32 %v335_v0, %v2562_v56  ;;  %v337_v42 = vpop.f32.mrb[30].mxu0  ;;  %1147 = vmatpush1.bf16.msra.mxu0 %v2520_v32  ;;  %v608_v40 = vpack.c.bf16 %v572_v46, %v568_v19  ;;  %v449_v52 = vadd.f32 %v448_v2, %v2569_v3  ;;  %v450_v60 = vpop.f32.mrb[30].mxu1  ;;  %v610_v37 = vpack.c.bf16 %v574_v55, %v570_v22  ;;  %v2161_v29 = vld [vmem:[#allocation5 + $0x28] sm:$0xff]   ;;  %v2163_v41 = vld [vmem:[#allocation5 + $0x30] sm:$0xff]   ;;  %v2165_v19 = vld [vmem:[#allocation5 + $0x38] sm:$0xff]  }
 0x147   :  { %v511_v59 = vmul.f32 0.2, %v334_v45  ;;  %v338_v31 = vadd.f32 %v337_v42, %v2557_v53  ;;  %v339_v1 = vpop.f32.mrb[31].mxu0  ;;  %1148 = vmatprep.subr.bf16.mxu0 %v2524_v33  ;;  %v513_v27 = vmul.f32 0.2, %v447_v61  ;;  %v451_v6 = vadd.f32 %v450_v60, %v2566_v62  ;;  %v452_v53 = vpop.f32.mrb[31].mxu1 }
 0x148   :  { %v512_v26 = vmul.f32 0.2, %v336_v30  ;;  %v340_v18 = vadd.f32 %v339_v1, %v2562_v56  ;;  %1103 = vmatprep.mubr.bf16.mxu0 %v608_v40  ;;  %v514_v9 = vmul.f32 0.2, %v449_v52  ;;  %v453_v4 = vadd.f32 %v452_v53, %v2569_v3  ;;  %1216 = vmatprep.mubr.bf16.mxu1 %v610_v37  ;;  %v679_v46 = vld [vmem:[%s2806_s4] sm:$0x3] }
 0x149   :  { %v515_v32 = vmul.f32 0.2, %v338_v31  ;;  %1104 = vmatmul.mubr.bf16.gmra.mrb[56].mxu0 %v607_v49  ;;  %v575_v33 = vmax.f32 %v334_v45, %v511_v59  ;;  %v577_v5 = vmax.f32 %v447_v61, %v513_v27  ;;  %v517_v23 = vmul.f32 0.2, %v451_v6  ;;  %1217 = vmatmul.mubr.bf16.gmra.mrb[40].mxu1 %v609_v8  ;;  %v2826_v22 = vld [vmem:[#allocation14_spill] sm:$0xff] }
 0x14a   :  { %v516_v20 = vmul.f32 0.2, %v340_v18  ;;  %1149 = vmatpush1.bf16.msra.mxu0 %v2526_v35  ;;  %v576_v57 = vmax.f32 %v336_v30, %v512_v26  ;;  %v578_v12 = vmax.f32 %v449_v52, %v514_v9  ;;  %v518_v62 = vmul.f32 0.2, %v453_v4 }
 0x14b   :  { %v579_v56 = vmax.f32 %v338_v31, %v515_v32  ;;  %1150 = vmatprep.subr.bf16.mxu0 %v2530_v36  ;;  %v581_v28 = vmax.f32 %v451_v6, %v517_v23  ;;  %v2824_v36 = vld [vmem:[#allocation12_spill] sm:$0xff]  ;;  %v2827_v43 = vsub.s32 0, %v2826_v22  ;;  %v2828_v54 = vsub.s32 1, %v2826_v22 }
 0x14c   :  { %v580_v50 = vmax.f32 %v340_v18, %v516_v20  ;;  %v582_v48 = vmax.f32 %v453_v4, %v518_v62 }
 0x14d   :  { %v611_v16 = vpack.c.bf16 %v579_v56, %v575_v33  ;;  %v613_v35 = vpack.c.bf16 %v581_v28, %v577_v5  ;;  %v2693_v25 = vrot.slane %v679_v46, %v2827_v43  ;;  %v2697_v45 = vrot.slane %v679_v46, %v2828_v54 }
 0x14e   :  { %1151 = vmatpush1.bf16.msra.mxu0 %v2532_v38  ;;  %v612_v3 = vpack.c.bf16 %v580_v50, %v576_v57  ;;  %v614_v34 = vpack.c.bf16 %v582_v48, %v578_v12  ;;  %v2150_v38 = vld [vmem:[#allocation5 + $0x40] sm:$0xff]  }
 0x14f   :  { %1152 = vmatprep.subr.bf16.mxu0 %v2536_v39  ;;  %v2151_v39 = vld [vmem:[#allocation5] sm:$0xff]   ;;  %1783 = vmatprep.subr.bf16.mxu1 %v2150_v38 }
 0x150   :  { %1113 = vmatprep.mubr.bf16.mxu0 %v612_v3  ;;  %1226 = vmatprep.mubr.bf16.mxu1 %v614_v34 }
 0x151   :  { %1114 = vmatmul.mubr.bf16.gmra.mrb[60].mxu0 %v611_v16  ;;  %1227 = vmatmul.mubr.bf16.gmra.mrb[44].mxu1 %v613_v35 }
 0x152   :  { %1153 = vmatpush1.bf16.msra.mxu0 %v2823_v7  ;;  %1156 = vmatprep.mubr.bf16.mxu0 %v2585_v14  ;;  %v2152_v14 = vld [vmem:[#allocation5 + $0x48] sm:$0xff]  }
 0x153   :  { %1154 = vmatprep.subr.bf16.mxu0 %v2824_v36  ;;  %1784 = vmatpush3.bf16.msra.mxu1 %v2151_v39 }
 0x154   :  { %1785 = vmatprep.subr.bf16.mxu1 %v2152_v14 }
 0x156   :  { %1155 = vmatpush1.bf16.msra.mxu0 %v2825_v11 }
 0x157   :  { %1786 = vmatpush3.bf16.msra.mxu1 %v2153_v15 }
 0x159   :  { %1157 = vmatmul.mubr.bf16.vlgmr.msra.gmra.mrb[32].mxu0 %v2580_v63  ;;  %v2154_v63 = vld [vmem:[#allocation5 + $0x50] sm:$0xff]  }
 0x15a   :  { %1166 = vmatprep.mubr.bf16.mxu0 %v2601_v44  ;;  %v2155_v44 = vld [vmem:[#allocation5 + $0x10] sm:$0xff]   ;;  %1787 = vmatprep.subr.bf16.mxu1 %v2154_v63 }
 0x15b   :  { %1788 = vmatpush3.bf16.msra.mxu1 %v2155_v44 }
 0x161   :  { %1167 = vmatmul.mubr.bf16.gmra.mrb[36].mxu0 %v2597_v13  ;;  %v2156_v13 = vld [vmem:[#allocation5 + $0x58] sm:$0xff]  }
 0x162   :  { %1176 = vmatprep.mubr.bf16.mxu0 %v2617_v21  ;;  %v2157_v21 = vld [vmem:[#allocation5 + $0x18] sm:$0xff]   ;;  %1789 = vmatprep.subr.bf16.mxu1 %v2156_v13 }
 0x163   :  { %1790 = vmatpush3.bf16.msra.mxu1 %v2157_v21 }
 0x169   :  { %1177 = vmatmul.mubr.bf16.gmra.mrb[40].mxu0 %v2613_v47  ;;  %v2158_v47 = vld [vmem:[#allocation5 + $0x60] sm:$0xff]  }
 0x16a   :  { %1186 = vmatprep.mubr.bf16.mxu0 %v2633_v17  ;;  %v2159_v17 = vld [vmem:[#allocation5 + $0x20] sm:$0xff]   ;;  %1791 = vmatprep.subr.bf16.mxu1 %v2158_v47 }
 0x16b   :  { %1792 = vmatpush3.bf16.msra.mxu1 %v2159_v17 }
 0x171   :  { %1187 = vmatmul.mubr.bf16.gmra.mrb[44].mxu0 %v2629_v10  ;;  %v2160_v10 = vld [vmem:[#allocation5 + $0x68] sm:$0xff]  }
 0x172   :  { %1793 = vmatprep.subr.bf16.mxu1 %v2160_v10 }
 0x173   :  { %1794 = vmatpush3.bf16.msra.mxu1 %v2161_v29 }
 0x174   :  { %1795 = vmatprep.subr.bf16.mxu1 %v2162_v24 }
 0x177   :  { %1796 = vmatpush3.bf16.msra.mxu1 %v2163_v41 }
 0x178   :  { %1797 = vmatprep.subr.bf16.mxu1 %v2164_v51 }
 0x17b   :  { %1798 = vmatpush3.bf16.msra.mxu1 %v2165_v19 }
 0x20c   :  { %v1085_v0 = vpop.f32.mrb[48].mxu0  ;;  %v1198_v58 = vpop.f32.mrb[32].mxu1 }
 0x20d   :  { %v1086_v49 = vadd.f32 %v1085_v0, %v2693_v25  ;;  %v1087_v55 = vpop.f32.mrb[49].mxu0  ;;  %v1200_v61 = vpop.f32.mrb[33].mxu1 }
 0x20e   :  { %v1088_v30 = vadd.f32 %v1087_v55, %v2697_v45  ;;  %v1089_v42 = vpop.f32.mrb[50].mxu0  ;;  %v1202_v8 = vpop.f32.mrb[34].mxu1 }
 0x20f   :  { %v1090_v40 = vadd.f32 %v1089_v42, %v2693_v25  ;;  %v1199_v59 = vadd.f32 %v1198_v58, %v1086_v49  ;;  %v1091_v31 = vpop.f32.mrb[51].mxu0  ;;  %v1204_v52 = vpop.f32.mrb[35].mxu1 }
 0x210   :  { %v1092_v1 = vadd.f32 %v1091_v31, %v2697_v45  ;;  %v1201_v2 = vadd.f32 %v1200_v61, %v1088_v30 }
 0x211   :  { %v1253_v26 = vmul.f32 0.2, %v1199_v59  ;;  %v1203_v18 = vadd.f32 %v1202_v8, %v1090_v40 }
 0x212   :  { %v1254_v60 = vmul.f32 0.2, %v1201_v2  ;;  %v1205_v37 = vadd.f32 %v1204_v52, %v1092_v1 }
 0x213   :  { %v1255_v32 = vmul.f32 0.2, %v1203_v18  ;;  %v1285_v53 = vmax.f32 %v1199_v59, %v1253_v26 }
 0x214   :  { %v1256_v27 = vmul.f32 0.2, %v1205_v37  ;;  %v1095_v6 = vpop.f32.mrb[52].mxu0  ;;  %v1286_v33 = vmax.f32 %v1201_v2, %v1254_v60  ;;  %v1208_v57 = vpop.f32.mrb[36].mxu1 }
 0x215   :  { %v1287_v20 = vmax.f32 %v1203_v18, %v1255_v32  ;;  %v1096_v9 = vadd.f32 %v1095_v6, %v2693_v25  ;;  %v1097_v4 = vpop.f32.mrb[53].mxu0  ;;  %v1210_v28 = vpop.f32.mrb[37].mxu1 }
 0x216   :  { %v1288_v56 = vmax.f32 %v1205_v37, %v1256_v27  ;;  %v1098_v5 = vadd.f32 %v1097_v4, %v2697_v45  ;;  %v1099_v23 = vpop.f32.mrb[54].mxu0  ;;  %v1212_v35 = vpop.f32.mrb[38].mxu1 }
 0x217   :  { %v1100_v50 = vadd.f32 %v1099_v23, %v2693_v25  ;;  %v1209_v12 = vadd.f32 %v1208_v57, %v1096_v9  ;;  %v1101_v62 = vpop.f32.mrb[55].mxu0  ;;  %v2706_v16 = vpack.c.bf16 %v1287_v20, %v1285_v53  ;;  %v1214_v11 = vpop.f32.mrb[39].mxu1 }
 0x218   :  { %v1102_v48 = vadd.f32 %v1101_v62, %v2697_v45  ;;  %v1211_v3 = vadd.f32 %v1210_v28, %v1098_v5  ;;  %v2709_v34 = vpack.c.bf16 %v1288_v56, %v1286_v33 }
 0x219   :  { %v1257_v7 = vmul.f32 0.2, %v1209_v12  ;;  %v1213_v36 = vadd.f32 %v1212_v35, %v1100_v50 }
 0x21a   :  { %v1258_v38 = vmul.f32 0.2, %v1211_v3  ;;  %v1215_v39 = vadd.f32 %v1214_v11, %v1102_v48 }
 0x21b   :  { %v1259_v14 = vmul.f32 0.2, %v1213_v36  ;;  %v1289_v44 = vmax.f32 %v1209_v12, %v1257_v7 }
 0x21c   :  { %v1260_v15 = vmul.f32 0.2, %v1215_v39  ;;  %v1105_v63 = vpop.f32.mrb[56].mxu0  ;;  %v1290_v17 = vmax.f32 %v1211_v3, %v1258_v38  ;;  %v1218_v41 = vpop.f32.mrb[40].mxu1 }
 0x21d   :  { %v1291_v13 = vmax.f32 %v1213_v36, %v1259_v14  ;;  %v1106_v21 = vadd.f32 %v1105_v63, %v2693_v25  ;;  %v1107_v47 = vpop.f32.mrb[57].mxu0  ;;  %v1220_v22 = vpop.f32.mrb[41].mxu1 }
 0x21e   :  { %v1292_v10 = vmax.f32 %v1215_v39, %v1260_v15  ;;  %v1108_v29 = vadd.f32 %v1107_v47, %v2697_v45  ;;  %v1109_v24 = vpop.f32.mrb[58].mxu0  ;;  %v1222_v49 = vpop.f32.mrb[42].mxu1 }
 0x21f   :  { %v1110_v51 = vadd.f32 %v1109_v24, %v2693_v25  ;;  %v1219_v19 = vadd.f32 %v1218_v41, %v1106_v21  ;;  %v1111_v46 = vpop.f32.mrb[59].mxu0  ;;  %v2714_v43 = vpack.c.bf16 %v1291_v13, %v1289_v44  ;;  %v1224_v58 = vpop.f32.mrb[43].mxu1 }
 0x220   :  { %v1112_v54 = vadd.f32 %v1111_v46, %v2697_v45  ;;  %v1221_v0 = vadd.f32 %v1220_v22, %v1108_v29  ;;  %v2717_v55 = vpack.c.bf16 %v1292_v10, %v1290_v17 }
 0x221   :  { %v1261_v30 = vmul.f32 0.2, %v1219_v19  ;;  %v1223_v42 = vadd.f32 %v1222_v49, %v1110_v51 }
 0x222   :  { %v1262_v40 = vmul.f32 0.2, %v1221_v0  ;;  %v1225_v59 = vadd.f32 %v1224_v58, %v1112_v54 }
 0x223   :  { %v1263_v31 = vmul.f32 0.2, %v1223_v42  ;;  %v1293_v2 = vmax.f32 %v1219_v19, %v1261_v30 }
 0x224   :  { %v1264_v61 = vmul.f32 0.2, %v1225_v59  ;;  %v1115_v1 = vpop.f32.mrb[60].mxu0  ;;  %v1294_v52 = vmax.f32 %v1221_v0, %v1262_v40  ;;  %v1228_v27 = vpop.f32.mrb[44].mxu1 }
 0x225   :  { %v1295_v8 = vmax.f32 %v1223_v42, %v1263_v31  ;;  %v1116_v26 = vadd.f32 %v1115_v1, %v2693_v25  ;;  %v1117_v18 = vpop.f32.mrb[61].mxu0  ;;  %v1230_v9 = vpop.f32.mrb[45].mxu1 }
 0x226   :  { %v1296_v60 = vmax.f32 %v1225_v59, %v1264_v61  ;;  %v1118_v37 = vadd.f32 %v1117_v18, %v2697_v45  ;;  %v1119_v32 = vpop.f32.mrb[62].mxu0  ;;  %v1232_v5 = vpop.f32.mrb[46].mxu1 }
 0x227   :  { %v1120_v6 = vadd.f32 %v1119_v32, %v2693_v25  ;;  %v1229_v53 = vadd.f32 %v1228_v27, %v1116_v26  ;;  %v1121_v20 = vpop.f32.mrb[63].mxu0  ;;  %v2722_v4 = vpack.c.bf16 %v1295_v8, %v1293_v2  ;;  %v1234_v12 = vpop.f32.mrb[47].mxu1 }
 0x228   :  { %v1122_v33 = vadd.f32 %v1121_v20, %v2697_v45  ;;  %v1231_v56 = vadd.f32 %v1230_v9, %v1118_v37  ;;  %v2725_v23 = vpack.c.bf16 %v1296_v60, %v1294_v52 }
 0x229   :  { %v1265_v57 = vmul.f32 0.2, %v1229_v53  ;;  %v1233_v50 = vadd.f32 %v1232_v5, %v1120_v6 }
 0x22a   :  { %v1266_v62 = vmul.f32 0.2, %v1231_v56  ;;  %v1235_v28 = vadd.f32 %v1234_v12, %v1122_v33 }
 0x22b   :  { %v1267_v48 = vmul.f32 0.2, %v1233_v50  ;;  %v1297_v7 = vmax.f32 %v1229_v53, %v1265_v57 }
 0x22c   :  { %v1268_v3 = vmul.f32 0.2, %v1235_v28  ;;  %v1158_v35 = vpop.f32.mrb[32].mxu0  ;;  %v1298_v39 = vmax.f32 %v1231_v56, %v1266_v62 }
 0x22d   :  { %v1299_v36 = vmax.f32 %v1233_v50, %v1267_v48  ;;  %v1955_v11 = vadd.f32 %v1158_v35, %v2693_v25  ;;  %v1160_v38 = vpop.f32.mrb[33].mxu0 }
 0x22e   :  { %v1300_v14 = vmax.f32 %v1235_v28, %v1268_v3  ;;  %v1956_v15 = vadd.f32 %v1160_v38, %v2697_v45  ;;  %v1162_v63 = vpop.f32.mrb[34].mxu0 }
 0x22f   :  { %v1237_v44 = vmul.f32 0.2, %v1955_v11  ;;  %v1957_v13 = vadd.f32 %v1162_v63, %v2693_v25  ;;  %v1164_v21 = vpop.f32.mrb[35].mxu0  ;;  %v2730_v47 = vpack.c.bf16 %v1299_v36, %v1297_v7 }
 0x230   :  { %v1238_v17 = vmul.f32 0.2, %v1956_v15  ;;  %v1958_v10 = vadd.f32 %v1164_v21, %v2697_v45  ;;  %v2733_v29 = vpack.c.bf16 %v1300_v14, %v1298_v39 }
 0x231   :  { %v1239_v24 = vmul.f32 0.2, %v1957_v13  ;;  %v1269_v51 = vmax.f32 %v1955_v11, %v1237_v44 }
 0x232   :  { %v1240_v41 = vmul.f32 0.2, %v1958_v10  ;;  %v1270_v46 = vmax.f32 %v1956_v15, %v1238_v17 }
 0x233   :  { %v1271_v19 = vmax.f32 %v1957_v13, %v1239_v24 }
 0x234   :  { %v1272_v22 = vmax.f32 %v1958_v10, %v1240_v41  ;;  %v1168_v54 = vpop.f32.mrb[36].mxu0 }
 0x235   :  { %v1301_v0 = vpack.c.bf16 %v1271_v19, %v1269_v51  ;;  %v1959_v49 = vadd.f32 %v1168_v54, %v2693_v25  ;;  %v1170_v30 = vpop.f32.mrb[37].mxu0 }
 0x236   :  { %v1960_v42 = vadd.f32 %v1170_v30, %v2697_v45  ;;  %v1172_v58 = vpop.f32.mrb[38].mxu0  ;;  %v1302_v40 = vpack.c.bf16 %v1272_v22, %v1270_v46 }
 0x237   :  { %v1241_v59 = vmul.f32 0.2, %v1959_v49  ;;  %v1961_v31 = vadd.f32 %v1172_v58, %v2693_v25  ;;  %v1174_v61 = vpop.f32.mrb[39].mxu0 }
 0x238   :  { %v1242_v1 = vmul.f32 0.2, %v1960_v42  ;;  %v1962_v2 = vadd.f32 %v1174_v61, %v2697_v45  ;;  %1484 = vmatprep.mubr.bf16.mxu1 %v1302_v40 }
 0x239   :  { %v1243_v8 = vmul.f32 0.2, %v1961_v31  ;;  %1485 = vmatmul.mubr.bf16.vlgmr.msra.gmra.mrb[48].mxu1 %v1301_v0  ;;  %v1273_v18 = vmax.f32 %v1959_v49, %v1241_v59 }
 0x23a   :  { %v1244_v26 = vmul.f32 0.2, %v1962_v2  ;;  %v1274_v60 = vmax.f32 %v1960_v42, %v1242_v1 }
 0x23b   :  { %v1275_v52 = vmax.f32 %v1961_v31, %v1243_v8 }
 0x23c   :  { %v1276_v37 = vmax.f32 %v1962_v2, %v1244_v26  ;;  %v1178_v32 = vpop.f32.mrb[40].mxu0 }
 0x23d   :  { %v1963_v27 = vadd.f32 %v1178_v32, %v2693_v25  ;;  %v1180_v6 = vpop.f32.mrb[41].mxu0  ;;  %v1303_v53 = vpack.c.bf16 %v1275_v52, %v1273_v18 }
 0x23e   :  { %v1964_v20 = vadd.f32 %v1180_v6, %v2697_v45  ;;  %v1182_v9 = vpop.f32.mrb[42].mxu0  ;;  %v1304_v33 = vpack.c.bf16 %v1276_v37, %v1274_v60 }
 0x23f   :  { %v1245_v56 = vmul.f32 0.2, %v1963_v27  ;;  %v1965_v5 = vadd.f32 %v1182_v9, %v2693_v25  ;;  %v1184_v57 = vpop.f32.mrb[43].mxu0 }
 0x240   :  { %v1246_v50 = vmul.f32 0.2, %v1964_v20  ;;  %v1966_v12 = vadd.f32 %v1184_v57, %v2697_v45  ;;  %1492 = vmatprep.mubr.bf16.mxu1 %v1304_v33 }
 0x241   :  { %v1247_v62 = vmul.f32 0.2, %v1965_v5  ;;  %1493 = vmatmul.mubr.bf16.gmra.mrb[52].mxu1 %v1303_v53  ;;  %v1277_v48 = vmax.f32 %v1963_v27, %v1245_v56 }
 0x242   :  { %v1248_v28 = vmul.f32 0.2, %v1966_v12  ;;  %v1278_v35 = vmax.f32 %v1964_v20, %v1246_v50 }
 0x243   :  { %v1279_v3 = vmax.f32 %v1965_v5, %v1247_v62 }
 0x244   :  { %v1280_v7 = vmax.f32 %v1966_v12, %v1248_v28  ;;  %v1188_v36 = vpop.f32.mrb[44].mxu0 }
 0x245   :  { %v1967_v11 = vadd.f32 %v1188_v36, %v2693_v25  ;;  %v1190_v38 = vpop.f32.mrb[45].mxu0  ;;  %v1305_v39 = vpack.c.bf16 %v1279_v3, %v1277_v48 }
 0x246   :  { %v1968_v14 = vadd.f32 %v1190_v38, %v2697_v45  ;;  %v1192_v15 = vpop.f32.mrb[46].mxu0  ;;  %v1306_v63 = vpack.c.bf16 %v1280_v7, %v1278_v35 }
 0x247   :  { %v1249_v44 = vmul.f32 0.2, %v1967_v11  ;;  %v1969_v13 = vadd.f32 %v1192_v15, %v2693_v25  ;;  %v1194_v21 = vpop.f32.mrb[47].mxu0  ;;  %v2245_v25 = vmov 0.0|0.0  }
 0x248   :  { %v1250_v17 = vmul.f32 0.2, %v1968_v14  ;;  %v1970_v10 = vadd.f32 %v1194_v21, %v2697_v45  ;;  %1500 = vmatprep.mubr.bf16.mxu1 %v1306_v63  ;;  %1899 = vmatprep.subr.bf16.mxu1 %v2245_v25  ;;  %v2247_v45 = vmov 0.0  }
 0x249   :  { %v1251_v24 = vmul.f32 0.2, %v1969_v13  ;;  %1501 = vmatmul.mubr.bf16.gmra.mrb[56].mxu1 %v1305_v39  ;;  %v1281_v51 = vmax.f32 %v1967_v11, %v1249_v44 }
 0x24a   :  { %v1252_v41 = vmul.f32 0.2, %v1970_v10  ;;  %v1282_v46 = vmax.f32 %v1968_v14, %v1250_v17 }
 0x24b   :  { %v1283_v19 = vmax.f32 %v1969_v13, %v1251_v24 }
 0x24c   :  { %v1284_v22 = vmax.f32 %v1970_v10, %v1252_v41 }
 0x24d   :  { %v1307_v54 = vpack.c.bf16 %v1283_v19, %v1281_v51 }
 0x24e   :  { %v1308_v0 = vpack.c.bf16 %v1284_v22, %v1282_v46 }
 0x250   :  { %1508 = vmatprep.mubr.bf16.mxu1 %v1308_v0 }
 0x251   :  { %1509 = vmatmul.mubr.bf16.gmra.mrb[60].mxu1 %v1307_v54 }
 0x252   :  { %1516 = vmatprep.mubr.bf16.mxu1 %v2709_v34 }
 0x259   :  { %1517 = vmatmul.mubr.bf16.gmra.mrb[64].mxu1 %v2706_v16  ;;  %v2759_v16 = vld [vmem:[%s2808_s6] ss:$0 sm:$0xff] }
 0x25a   :  { %1524 = vmatprep.mubr.bf16.mxu1 %v2717_v55 }
 0x261   :  { %1525 = vmatmul.mubr.bf16.gmra.mrb[68].mxu1 %v2714_v43 }
 0x262   :  { %1532 = vmatprep.mubr.bf16.mxu1 %v2725_v23 }
 0x269   :  { %1533 = vmatmul.mubr.bf16.gmra.mrb[72].mxu1 %v2722_v4 }
 0x26a   :  { %1540 = vmatprep.mubr.bf16.mxu1 %v2733_v29 }
 0x271   :  { %1541 = vmatmul.mubr.bf16.gmra.mrb[76].mxu1 %v2730_v47 }
 0x272   :  { %1896 = vmatprep.mubr.msk.f32.mxu1 %vm2246_vm1, %v2247_v45 }
 0x30c   :  { %v1799_v34 = vpop.f32.mrb[48].mxu1 }
 0x30d   :  { %v1800_v43 = vpop.f32.mrb[49].mxu1 }
 0x30e   :  { %v1801_v55 = vadd.f32 %v1800_v43, %v1799_v34  ;;  %v1802_v23 = vpop.f32.mrb[50].mxu1 }
 0x30f   :  { %v1803_v4 = vpop.f32.mrb[51].mxu1 }
 0x310   :  { %v1487_v29 = vadd.f32 %v1801_v55, %v2759_v16  ;;  %v1804_v49 = vadd.f32 %v1803_v4, %v1802_v23 }
 0x312   :  { %v1549_v47 = vmul.f32 0.2, %v1487_v29  ;;  %v1490_v30 = vadd.f32 %v1804_v49, %v2759_v16 }
 0x314   :  { %v1550_v42 = vmul.f32 0.2, %v1490_v30  ;;  %v1805_v58 = vpop.f32.mrb[52].mxu1  ;;  %v1565_v59 = vmax.f32 %v1487_v29, %v1549_v47 }
 0x315   :  { %v1806_v40 = vpop.f32.mrb[53].mxu1 }
 0x316   :  { %v1566_v31 = vmax.f32 %v1490_v30, %v1550_v42  ;;  %v1807_v61 = vadd.f32 %v1806_v40, %v1805_v58  ;;  %v1808_v1 = vpop.f32.mrb[54].mxu1 }
 0x317   :  { %v1809_v2 = vpop.f32.mrb[55].mxu1 }
 0x318   :  { %v1900_v8 = vpack.c.bf16 %v1566_v31, %v1565_v59  ;;  %v1495_v26 = vadd.f32 %v1807_v61, %v2759_v16  ;;  %v1810_v18 = vadd.f32 %v1809_v2, %v1808_v1 }
 0x31a   :  { %v1551_v52 = vmul.f32 0.2, %v1495_v26  ;;  %v1498_v60 = vadd.f32 %v1810_v18, %v2759_v16  ;;  %1901 = vmatpush3.bf16.xpose.msra.mxu1 %v1900_v8 }
 0x31b   :  { %1902 = vmatprep.subr.bf16.mxu1 %v2245_v25 }
 0x31c   :  { %v1552_v37 = vmul.f32 0.2, %v1498_v60  ;;  %v1811_v32 = vpop.f32.mrb[56].mxu1  ;;  %v1567_v6 = vmax.f32 %v1495_v26, %v1551_v52 }
 0x31d   :  { %v1812_v27 = vpop.f32.mrb[57].mxu1 }
 0x31e   :  { %v1568_v53 = vmax.f32 %v1498_v60, %v1552_v37  ;;  %v1813_v20 = vadd.f32 %v1812_v27, %v1811_v32  ;;  %v1814_v9 = vpop.f32.mrb[58].mxu1 }
 0x31f   :  { %v1815_v33 = vpop.f32.mrb[59].mxu1 }
 0x320   :  { %v1903_v56 = vpack.c.bf16 %v1568_v53, %v1567_v6  ;;  %v1503_v5 = vadd.f32 %v1813_v20, %v2759_v16  ;;  %v1816_v57 = vadd.f32 %v1815_v33, %v1814_v9 }
 0x322   :  { %v1553_v50 = vmul.f32 0.2, %v1503_v5  ;;  %v1506_v12 = vadd.f32 %v1816_v57, %v2759_v16  ;;  %1904 = vmatpush3.bf16.xpose.msra.mxu1 %v1903_v56 }
 0x323   :  { %1905 = vmatprep.subr.bf16.mxu1 %v2245_v25 }
 0x324   :  { %v1554_v62 = vmul.f32 0.2, %v1506_v12  ;;  %v1817_v28 = vpop.f32.mrb[60].mxu1  ;;  %v1569_v3 = vmax.f32 %v1503_v5, %v1553_v50 }
 0x325   :  { %v1818_v48 = vpop.f32.mrb[61].mxu1 }
 0x326   :  { %v1570_v35 = vmax.f32 %v1506_v12, %v1554_v62  ;;  %v1819_v7 = vadd.f32 %v1818_v48, %v1817_v28  ;;  %v1820_v36 = vpop.f32.mrb[62].mxu1 }
 0x327   :  { %v1821_v11 = vpop.f32.mrb[63].mxu1 }
 0x328   :  { %v1906_v38 = vpack.c.bf16 %v1570_v35, %v1569_v3  ;;  %v1511_v39 = vadd.f32 %v1819_v7, %v2759_v16  ;;  %v1822_v14 = vadd.f32 %v1821_v11, %v1820_v36  ;;  %v1581_v11 = vld [vmem:[%s2809_s7] sm:$0x1] }
 0x32a   :  { %v1555_v15 = vmul.f32 0.2, %v1511_v39  ;;  %v1514_v63 = vadd.f32 %v1822_v14, %v2759_v16  ;;  %1907 = vmatpush3.bf16.xpose.msra.mxu1 %v1906_v38  ;;  %v1582_v38 = vld [vmem:[%s2810_s8] sm:$0x1] }
 0x32b   :  { %1908 = vmatprep.subr.bf16.mxu1 %v2245_v25 }
 0x32c   :  { %v1556_v44 = vmul.f32 0.2, %v1514_v63  ;;  %v1823_v13 = vpop.f32.mrb[64].mxu1  ;;  %v1571_v17 = vmax.f32 %v1511_v39, %v1555_v15 }
 0x32d   :  { %v1824_v21 = vpop.f32.mrb[65].mxu1 }
 0x32e   :  { %v1572_v10 = vmax.f32 %v1514_v63, %v1556_v44  ;;  %v1825_v24 = vadd.f32 %v1824_v21, %v1823_v13  ;;  %v1826_v41 = vpop.f32.mrb[66].mxu1 }
 0x32f   :  { %v1827_v51 = vpop.f32.mrb[67].mxu1 }
 0x330   :  { %v1909_v19 = vpack.c.bf16 %v1572_v10, %v1571_v17  ;;  %v1519_v46 = vadd.f32 %v1825_v24, %v2759_v16  ;;  %v1828_v22 = vadd.f32 %v1827_v51, %v1826_v41 }
 0x332   :  { %v1557_v54 = vmul.f32 0.2, %v1519_v46  ;;  %v1522_v0 = vadd.f32 %v1828_v22, %v2759_v16  ;;  %1910 = vmatpush3.bf16.xpose.msra.mxu1 %v1909_v19 }
 0x333   :  { %1911 = vmatprep.subr.bf16.mxu1 %v2245_v25 }
 0x334   :  { %v1558_v45 = vmul.f32 0.2, %v1522_v0  ;;  %v1829_v34 = vpop.f32.mrb[68].mxu1  ;;  %v1573_v55 = vmax.f32 %v1519_v46, %v1557_v54 }
 0x335   :  { %v1830_v43 = vpop.f32.mrb[69].mxu1 }
 0x336   :  { %v1574_v23 = vmax.f32 %v1522_v0, %v1558_v45  ;;  %v1831_v4 = vadd.f32 %v1830_v43, %v1829_v34  ;;  %v1832_v29 = vpop.f32.mrb[70].mxu1 }
 0x337   :  { %v1833_v49 = vpop.f32.mrb[71].mxu1 }
 0x338   :  { %v1912_v47 = vpack.c.bf16 %v1574_v23, %v1573_v55  ;;  %v1527_v30 = vadd.f32 %v1831_v4, %v2759_v16  ;;  %v1834_v42 = vadd.f32 %v1833_v49, %v1832_v29 }
 0x33a   :  { %v1559_v58 = vmul.f32 0.2, %v1527_v30  ;;  %v1530_v40 = vadd.f32 %v1834_v42, %v2759_v16  ;;  %1913 = vmatpush3.bf16.xpose.msra.mxu1 %v1912_v47 }
 0x33b   :  { %1914 = vmatprep.subr.bf16.mxu1 %v2245_v25 }
 0x33c   :  { %v1560_v59 = vmul.f32 0.2, %v1530_v40  ;;  %v1835_v31 = vpop.f32.mrb[72].mxu1  ;;  %v1575_v1 = vmax.f32 %v1527_v30, %v1559_v58 }
 0x33d   :  { %v1836_v61 = vpop.f32.mrb[73].mxu1 }
 0x33e   :  { %v1576_v2 = vmax.f32 %v1530_v40, %v1560_v59  ;;  %v1837_v8 = vadd.f32 %v1836_v61, %v1835_v31  ;;  %v1838_v26 = vpop.f32.mrb[74].mxu1 }
 0x33f   :  { %v1839_v18 = vpop.f32.mrb[75].mxu1 }
 0x340   :  { %v1915_v52 = vpack.c.bf16 %v1576_v2, %v1575_v1  ;;  %v1535_v60 = vadd.f32 %v1837_v8, %v2759_v16  ;;  %v1840_v37 = vadd.f32 %v1839_v18, %v1838_v26 }
 0x342   :  { %v1561_v32 = vmul.f32 0.2, %v1535_v60  ;;  %v1538_v27 = vadd.f32 %v1840_v37, %v2759_v16  ;;  %1916 = vmatpush3.bf16.xpose.msra.mxu1 %v1915_v52 }
 0x343   :  { %1917 = vmatprep.subr.bf16.mxu1 %v2245_v25 }
 0x344   :  { %v1562_v6 = vmul.f32 0.2, %v1538_v27  ;;  %v1841_v53 = vpop.f32.mrb[76].mxu1  ;;  %v1577_v9 = vmax.f32 %v1535_v60, %v1561_v32 }
 0x345   :  { %v1842_v20 = vpop.f32.mrb[77].mxu1 }
 0x346   :  { %v1578_v33 = vmax.f32 %v1538_v27, %v1562_v6  ;;  %v1843_v56 = vadd.f32 %v1842_v20, %v1841_v53  ;;  %v1844_v5 = vpop.f32.mrb[78].mxu1 }
 0x347   :  { %v1845_v57 = vpop.f32.mrb[79].mxu1 }
 0x348   :  { %v1918_v50 = vpack.c.bf16 %v1578_v33, %v1577_v9  ;;  %v1543_v12 = vadd.f32 %v1843_v56, %v2759_v16  ;;  %v1846_v62 = vadd.f32 %v1845_v57, %v1844_v5 }
 0x34a   :  { %v1563_v28 = vmul.f32 0.2, %v1543_v12  ;;  %v1546_v48 = vadd.f32 %v1846_v62, %v2759_v16  ;;  %1919 = vmatpush3.bf16.xpose.msra.mxu1 %v1918_v50 }
 0x34b   :  { %1920 = vmatprep.subr.bf16.mxu1 %v2245_v25 }
 0x34c   :  { %v1564_v3 = vmul.f32 0.2, %v1546_v48  ;;  %v1579_v35 = vmax.f32 %v1543_v12, %v1563_v28 }
 0x34e   :  { %v1580_v7 = vmax.f32 %v1546_v48, %v1564_v3 }
 0x350   :  { %v1921_v36 = vpack.c.bf16 %v1580_v7, %v1579_v35 }
 0x352   :  { %1922 = vmatpush3.bf16.xpose.msra.mxu1 %v1921_v36 }
 0x359   :  { %1897 = vmatmul.mubr.f32.vlgmr.msra.gmra.mrb[80].mxu1 %v1581_v11 }
 0x42c   :  { %v1649_v16 = vpop.f32.mrb[80].mxu1 }
 0x42d   :  { %v1650_v39 = vadd.f32 %v1649_v16, %v1582_v38  ;;  %v1898_v14 = vpop.f32.mrb[81].mxu1 }
 0x42f   :  { %1653 = vst [vmem:[#allocation7] sm:$0x1] %v1650_v39 }
 0x430   :  { %2221 = shalt.err (!%p2218_p6)
}
 0x431   :  { %s2222_s19 = scalar_lea.hbm %s2811_s9, 16 }
 0x432   :  { %p2223_p7 = scmp.ne.s32.totalorder %s2811_s9, %s2222_s19  ;;  %p2226_p8 = scmp.lt.u32.totalorder %s2222_s19, %s2811_s9 }
 0x434   :  { %p2228_p9 = pnand %p2226_p8, %p2223_p7 }
 0x436   :  { %2231 = shalt.err (!%p2228_p9)
}
 0x437   :  { %1663 = dma.vmem_to_hbm [thread:$0]  %s1661_s15, 16, %s2811_s9, [#allocation4]  }
 0x438   :  { %2236 = dma.done.wait [#allocation4], 16  }
 0x439   :  { %2237 = vsyncadd [#allocation4], 4294967280 }
 0x43a   :  { %1667 = vsyncpa [#allocation3], 1 }
 0x43b   :  { %1668 = vsyncpa [#allocation6], 1 }
 0x43c   :  { %1669 = vsyncpa [#allocation4], 1 }

</bundles_post_ra>
